<compile_context>
chip_gen: v7x
topology: tpu7x:2x2x1
jax: 0.10.0
libtpu: 0.0.40
codegen_flags: <defaults>
</compile_context>

<pallas_src>
import functools

import jax
import jax.numpy as jnp
from jax.experimental import pallas as pl
from jax.experimental.pallas import tpu as pltpu


# ----------------------------- config ---------------------------------------
CFG = dict(
    batch=2,
    seq=8,
    hidden=32,
    heads=2,
    head_dim=16,      # heads * head_dim == hidden
    intermediate=64,
    vocab=128,
    type_vocab=2,
    max_pos=16,
    layers=2,
    ln_eps=1e-12,
)


# --------------------------- in-kernel helpers --------------------------------
def _layernorm(x, g, b, eps):
    mean = jnp.mean(x, axis=-1, keepdims=True)
    var = jnp.mean((x - mean) ** 2, axis=-1, keepdims=True)
    return (x - mean) * jax.lax.rsqrt(var + eps) * g + b


def _gelu(x):
    # tanh-approx GELU (real BERT/m3e uses erf-GELU; fine for synthetic weights).
    return 0.5 * x * (1.0 + jnp.tanh(0.7978845608028654 * (x + 0.044715 * x * x * x)))


# --------------------------- fused encoder kernel -----------------------------
def _encoder_kernel(
    emb_ref, mask_ref,
    emb_ln_g_ref, emb_ln_b_ref,
    wqkv_ref, bqkv_ref, wo_ref, bo_ref, ln1_g_ref, ln1_b_ref,
    w1_ref, b1_ref, w2_ref, b2_ref, ln2_g_ref, ln2_b_ref,
    out_ref,
    *, cfg,
):
    B, S, H = cfg["batch"], cfg["seq"], cfg["hidden"]
    nh, dh, L = cfg["heads"], cfg["head_dim"], cfg["layers"]
    eps = cfg["ln_eps"]
    BS = B * S
    scale = 1.0 / (dh ** 0.5)
    bf16 = jnp.bfloat16
    f32 = jnp.float32

    mask3 = mask_ref[...]                                # (B, 1, S) f32 {0,1}
    key_bias = (1.0 - mask3) * -10000.0                  # additive key mask, built once

    # Embedding LayerNorm (residual stream x is kept in f32, rows = B*S).
    x = _layernorm(emb_ref[...].astype(f32), emb_ln_g_ref[...], emb_ln_b_ref[...], eps)

    for l in range(L):                                   # static unroll, L=2
        # ---- self-attention: fused QKV projection (bf16 in, f32 acc) ----
        qkv = jnp.dot(x.astype(bf16), wqkv_ref[l],
                      preferred_element_type=f32) + bqkv_ref[l]          # (BS, 3H) f32
        qkv_bf = qkv.astype(bf16)                        # single bf16 cast per layer

        ctx_heads = []
        # TODO(synk): at real shapes (nh=12, dh=64) fold heads into the einsum
        # batch dim (or a grid axis) instead of this static per-head unroll.
        for h in range(nh):
            q = qkv_bf[:, h * dh:(h + 1) * dh].reshape(B, S, dh)
            k = qkv_bf[:, H + h * dh:H + (h + 1) * dh].reshape(B, S, dh)
            v = qkv_bf[:, 2 * H + h * dh:2 * H + (h + 1) * dh].reshape(B, S, dh)
            s = jnp.einsum('bqd,bkd->bqk', q, k,
                           preferred_element_type=f32) * scale + key_bias  # (B, S, S)
            s = s - jnp.max(s, axis=-1, keepdims=True)
            p = jnp.exp(s)
            p = p * pl.reciprocal(jnp.sum(p, axis=-1, keepdims=True), approx=True)
            ctx = jnp.einsum('bqk,bkd->bqd', p.astype(bf16), v,
                             preferred_element_type=f32)                  # (B, S, dh)
            ctx_heads.append(ctx.reshape(BS, dh))

        # Merge heads, then ONE full-K output projection against Wo.
        ctx_full = jnp.concatenate(ctx_heads, axis=-1).astype(bf16)       # (BS, H)
        attn_out = jnp.dot(ctx_full, wo_ref[l],
                           preferred_element_type=f32) + bo_ref[l]        # (BS, H)
        # residual add fused into the LayerNorm
        x = _layernorm(x + attn_out, ln1_g_ref[l], ln1_b_ref[l], eps)

        # ---- FFN: bias + GELU fused with the two matmuls ----
        h1 = jnp.dot(x.astype(bf16), w1_ref[l],
                     preferred_element_type=f32) + b1_ref[l]              # (BS, I)
        h1 = _gelu(h1)
        h2 = jnp.dot(h1.astype(bf16), w2_ref[l],
                     preferred_element_type=f32) + b2_ref[l]              # (BS, H)
        x = _layernorm(x + h2, ln2_g_ref[l], ln2_b_ref[l], eps)

    # ---- masked mean pooling (SentenceTransformer m3e-base pooling) ----
    x3 = x.reshape(B, S, H)
    num = jnp.einsum('bqs,bsh->bqh', mask3, x3, preferred_element_type=f32)  # (B,1,H)
    den = jnp.maximum(jnp.sum(mask3, axis=-1, keepdims=True), 1e-9)          # (B,1,1)
    out_ref[...] = (num / den).astype(out_ref.dtype)     # exact divide, one dense store


def fused_encoder(emb_flat, maskf, p, cfg):
    B, H = cfg["batch"], cfg["hidden"]
    args = [emb_flat, maskf, p["emb_ln_g"], p["emb_ln_b"],
            p["wqkv"], p["bqkv"], p["wo"], p["bo"], p["ln1_g"], p["ln1_b"],
            p["w1"], p["b1"], p["w2"], p["b2"], p["ln2_g"], p["ln2_b"]]
    # No grid: whole arrays land in VMEM once (single-buffered weights),
    # whole batch processed in one invocation.
    out = pl.pallas_call(
        functools.partial(_encoder_kernel, cfg=cfg),
        out_shape=jax.ShapeDtypeStruct((B, 1, H), jnp.float32),
        compiler_params=pltpu.CompilerParams(vmem_limit_bytes=32 * 1024 * 1024),
    )(*args)
    return out.reshape(B, H)


# ------------------------- params & host-side glue ----------------------------
def init_params(key, cfg):
    H, I, L = cfg["hidden"], cfg["intermediate"], cfg["layers"]

    def normal(k, shape):
        return 0.02 * jax.random.normal(k, shape, dtype=jnp.float32)

    keys = iter(jax.random.split(key, 3 + 6 * L))
    params = dict(
        word_emb=normal(next(keys), (cfg["vocab"], H)),
        pos_emb=normal(next(keys), (cfg["max_pos"], H)),
        type_emb=normal(next(keys), (cfg["type_vocab"], H)),
        emb_ln_g=jnp.ones((1, H), jnp.float32),
        emb_ln_b=jnp.zeros((1, H), jnp.float32),
    )
    wqkv, wo, w1, w2 = [], [], [], []
    for _ in range(L):
        wqkv.append(jnp.concatenate([normal(next(keys), (H, H)) for _ in range(3)],
                                    axis=1))            # fused Q|K|V: (H, 3H)
        wo.append(normal(next(keys), (H, H)))
        w1.append(normal(next(keys), (H, I)))
        w2.append(normal(next(keys), (I, H)))
    params.update(
        # Matmul weights stored in bf16 (MXU inputs); biases / LN params stay f32.
        wqkv=jnp.stack(wqkv).astype(jnp.bfloat16),       # (L, H, 3H)
        bqkv=jnp.zeros((L, 1, 3 * H), jnp.float32),
        wo=jnp.stack(wo).astype(jnp.bfloat16),           # (L, H, H)
        bo=jnp.zeros((L, 1, H), jnp.float32),
        ln1_g=jnp.ones((L, 1, H), jnp.float32),
        ln1_b=jnp.zeros((L, 1, H), jnp.float32),
        w1=jnp.stack(w1).astype(jnp.bfloat16),           # (L, H, I)
        b1=jnp.zeros((L, 1, I), jnp.float32),
        w2=jnp.stack(w2).astype(jnp.bfloat16),           # (L, I, H)
        b2=jnp.zeros((L, 1, H), jnp.float32),
        ln2_g=jnp.ones((L, 1, H), jnp.float32),
        ln2_b=jnp.zeros((L, 1, H), jnp.float32),
    )
    return params


def wrapper_forward(params, input_ids, token_type_ids, attention_mask, cfg):
    """Equivalent of Wrapper.forward: returns sentence embeddings (B, hidden)."""
    B, S, H = cfg["batch"], cfg["seq"], cfg["hidden"]
    positions = jnp.arange(S, dtype=jnp.int32)
    # Embedding gathers kept in plain-JAX glue (data-dependent gather).
    emb = (params["word_emb"][input_ids]
           + params["pos_emb"][positions][None, :, :]
           + params["type_emb"][token_type_ids])             # (B, S, H) f32
    # bf16 activations into the kernel (halves the activation DMA); rows flattened.
    emb_flat = emb.astype(jnp.bfloat16).reshape(B * S, H)
    maskf = attention_mask.astype(jnp.float32).reshape(B, 1, S)
    return fused_encoder(emb_flat, maskf, params, cfg)


# --------------------- plain-JAX reference (same numerics) --------------------
def reference_forward(params, input_ids, token_type_ids, attention_mask, cfg):
    B, S, H = cfg["batch"], cfg["seq"], cfg["hidden"]
    nh, dh, L = cfg["heads"], cfg["head_dim"], cfg["layers"]
    eps = cfg["ln_eps"]
    bf16, f32 = jnp.bfloat16, jnp.float32
    emb = (params["word_emb"][input_ids]
           + params["pos_emb"][jnp.arange(S)][None, :, :]
           + params["type_emb"][token_type_ids])
    emb = emb.astype(bf16).astype(f32)                       # match kernel input dtype
    maskf = attention_mask.astype(f32)                       # (B, S)
    bias = (1.0 - maskf) * -10000.0

    def ln(x, g, b):
        mu = x.mean(-1, keepdims=True)
        var = ((x - mu) ** 2).mean(-1, keepdims=True)
        return (x - mu) * jax.lax.rsqrt(var + eps) * g + b

    x = ln(emb, params["emb_ln_g"], params["emb_ln_b"])
    for l in range(L):
        qkv = jnp.einsum('bsh,hk->bsk', x.astype(bf16), params["wqkv"][l],
                         preferred_element_type=f32) + params["bqkv"][l]
        q, k, v = jnp.split(qkv.astype(bf16), 3, axis=-1)
        split = lambda t: t.reshape(B, S, nh, dh).transpose(0, 2, 1, 3)
        q, k, v = split(q), split(k), split(v)
        s = jnp.einsum('bhqd,bhkd->bhqk', q, k,
                       preferred_element_type=f32) / (dh ** 0.5)
        s = s + bias[:, None, None, :]
        p = jax.nn.softmax(s, axis=-1)
        ctx = jnp.einsum('bhqk,bhkd->bhqd', p.astype(bf16), v,
                         preferred_element_type=f32)
        ctx = ctx.transpose(0, 2, 1, 3).reshape(B, S, H)
        attn_out = jnp.einsum('bsh,hk->bsk', ctx.astype(bf16), params["wo"][l],
                              preferred_element_type=f32) + params["bo"][l]
        x = ln(x + attn_out, params["ln1_g"][l], params["ln1_b"][l])
        h1 = jnp.einsum('bsh,hk->bsk', x.astype(bf16), params["w1"][l],
                        preferred_element_type=f32) + params["b1"][l]
        h1 = 0.5 * h1 * (1.0 + jnp.tanh(0.7978845608028654 * (h1 + 0.044715 * h1 ** 3)))
        h2 = jnp.einsum('bsh,hk->bsk', h1.astype(bf16), params["w2"][l],
                        preferred_element_type=f32) + params["b2"][l]
        x = ln(x + h2, params["ln2_g"][l], params["ln2_b"][l])
    num = jnp.einsum('bs,bsh->bh', maskf, x)
    den = jnp.maximum(maskf.sum(-1, keepdims=True), 1e-9)
    return num / den


# ------------------------------- main ----------------------------------------
if __name__ == "__main__":
    cfg = CFG
    key = jax.random.PRNGKey(0)
    k_param, k_ids = jax.random.split(key)

    params = init_params(k_param, cfg)

    B, S = cfg["batch"], cfg["seq"]
    input_ids = jax.random.randint(k_ids, (B, S), 0, cfg["vocab"], dtype=jnp.int32)
    token_type_ids = jnp.zeros((B, S), dtype=jnp.int32)
    # Second sequence has 3 padding tokens to exercise the mask path.
    attention_mask = jnp.array(
        [[1, 1, 1, 1, 1, 1, 1, 1],
         [1, 1, 1, 1, 1, 0, 0, 0]], dtype=jnp.int32)

    fwd = jax.jit(functools.partial(wrapper_forward, cfg=cfg))
    emb = jax.block_until_ready(fwd(params, input_ids, token_type_ids, attention_mask))

    assert emb.shape == (B, cfg["hidden"])
    assert bool(jnp.all(jnp.isfinite(emb)))

    ref = reference_forward(params, input_ids, token_type_ids, attention_mask, cfg)
    max_diff = float(jnp.max(jnp.abs(emb - ref)))
    assert max_diff < 5e-2, f"mismatch vs reference: {max_diff}"

    print("KERNEL_OK")
</pallas_src>

<mosaic_0001>
module attributes {stable_mosaic.version = 11 : i64} {
  func.func @_encoder_kernel(%arg0: memref<16x32xbf16, #tpu.memory_space<vmem>>, %arg1: memref<2x1x8xf32, #tpu.memory_space<vmem>>, %arg2: memref<1x32xf32, #tpu.memory_space<vmem>>, %arg3: memref<1x32xf32, #tpu.memory_space<vmem>>, %arg4: memref<2x32x96xbf16, #tpu.memory_space<vmem>>, %arg5: memref<2x1x96xf32, #tpu.memory_space<vmem>>, %arg6: memref<2x32x32xbf16, #tpu.memory_space<vmem>>, %arg7: memref<2x1x32xf32, #tpu.memory_space<vmem>>, %arg8: memref<2x1x32xf32, #tpu.memory_space<vmem>>, %arg9: memref<2x1x32xf32, #tpu.memory_space<vmem>>, %arg10: memref<2x32x64xbf16, #tpu.memory_space<vmem>>, %arg11: memref<2x1x64xf32, #tpu.memory_space<vmem>>, %arg12: memref<2x64x32xbf16, #tpu.memory_space<vmem>>, %arg13: memref<2x1x32xf32, #tpu.memory_space<vmem>>, %arg14: memref<2x1x32xf32, #tpu.memory_space<vmem>>, %arg15: memref<2x1x32xf32, #tpu.memory_space<vmem>>, %arg16: memref<2x1x32xf32, #tpu.memory_space<vmem>>) attributes {dimension_semantics = [], scalar_prefetch = 0 : i64, scratch_operands = 0 : i64, tpu.core_type = #tpu.core_type<tc>} {
    %c0 = arith.constant 0 : index
    %c0_0 = arith.constant 0 : index
    %c0_1 = arith.constant 0 : index
    %0 = vector.load %arg1[%c0, %c0_0, %c0_1] : memref<2x1x8xf32, #tpu.memory_space<vmem>>, vector<2x1x8xf32>
    %cst = arith.constant 1.000000e+00 : f32
    %1 = vector.broadcast %cst : f32 to vector<2x1x8xf32>
    %2 = arith.subf %1, %0 : vector<2x1x8xf32>
    %cst_2 = arith.constant -1.000000e+04 : f32
    %3 = vector.broadcast %cst_2 : f32 to vector<2x1x8xf32>
    %4 = arith.mulf %2, %3 : vector<2x1x8xf32>
    %c0_3 = arith.constant 0 : index
    %c0_4 = arith.constant 0 : index
    %5 = vector.load %arg0[%c0_3, %c0_4] : memref<16x32xbf16, #tpu.memory_space<vmem>>, vector<16x32xbf16>
    %6 = arith.extf %5 : vector<16x32xbf16> to vector<16x32xf32>
    %c0_5 = arith.constant 0 : index
    %c0_6 = arith.constant 0 : index
    %7 = vector.load %arg2[%c0_5, %c0_6] : memref<1x32xf32, #tpu.memory_space<vmem>>, vector<1x32xf32>
    %c0_7 = arith.constant 0 : index
    %c0_8 = arith.constant 0 : index
    %8 = vector.load %arg3[%c0_7, %c0_8] : memref<1x32xf32, #tpu.memory_space<vmem>>, vector<1x32xf32>
    %cst_9 = arith.constant dense<0.000000e+00> : vector<16xf32>
    %9 = vector.multi_reduction <add>, %6, %cst_9 [1] : vector<16x32xf32> to vector<16xf32>
    %10 = vector.shape_cast %9 : vector<16xf32> to vector<16x1xf32>
    %cst_10 = arith.constant 3.200000e+01 : f32
    %11 = vector.broadcast %cst_10 : f32 to vector<16x1xf32>
    %12 = arith.divf %10, %11 : vector<16x1xf32>
    %13 = vector.broadcast %12 : vector<16x1xf32> to vector<16x32xf32>
    %14 = arith.subf %6, %13 : vector<16x32xf32>
    %15 = arith.mulf %14, %14 : vector<16x32xf32>
    %cst_11 = arith.constant dense<0.000000e+00> : vector<16xf32>
    %16 = vector.multi_reduction <add>, %15, %cst_11 [1] : vector<16x32xf32> to vector<16xf32>
    %17 = vector.shape_cast %16 : vector<16xf32> to vector<16x1xf32>
    %cst_12 = arith.constant 3.200000e+01 : f32
    %18 = vector.broadcast %cst_12 : f32 to vector<16x1xf32>
    %19 = arith.divf %17, %18 : vector<16x1xf32>
    %20 = vector.broadcast %12 : vector<16x1xf32> to vector<16x32xf32>
    %21 = arith.subf %6, %20 : vector<16x32xf32>
    %cst_13 = arith.constant 9.99999996E-13 : f32
    %22 = vector.broadcast %cst_13 : f32 to vector<16x1xf32>
    %23 = arith.addf %19, %22 : vector<16x1xf32>
    %24 = math.rsqrt %23 : vector<16x1xf32>
    %25 = vector.broadcast %24 : vector<16x1xf32> to vector<16x32xf32>
    %26 = arith.mulf %21, %25 : vector<16x32xf32>
    %27 = vector.broadcast %7 : vector<1x32xf32> to vector<16x32xf32>
    %28 = arith.mulf %26, %27 : vector<16x32xf32>
    %29 = vector.broadcast %8 : vector<1x32xf32> to vector<16x32xf32>
    %30 = arith.addf %28, %29 : vector<16x32xf32>
    %31 = arith.truncf %30 : vector<16x32xf32> to vector<16x32xbf16>
    %c0_14 = arith.constant 0 : index
    %c0_15 = arith.constant 0 : index
    %c0_16 = arith.constant 0 : index
    %32 = vector.load %arg4[%c0_14, %c0_15, %c0_16] : memref<2x32x96xbf16, #tpu.memory_space<vmem>>, vector<1x32x96xbf16>
    %33 = vector.shape_cast %32 : vector<1x32x96xbf16> to vector<32x96xbf16>
    %cst_17 = arith.constant dense<0.000000e+00> : vector<16x96xf32>
    %34 = tpu.matmul %31, %33, %cst_17 {dimension_numbers = #tpu.dot_dimension_numbers<[1], [0], [0], [1], [0, 0, 1, 1], [], []>} : vector<16x32xbf16>, vector<32x96xbf16>, vector<16x96xf32> -> vector<16x96xf32>
    %c0_18 = arith.constant 0 : index
    %c0_19 = arith.constant 0 : index
    %c0_20 = arith.constant 0 : index
    %35 = vector.load %arg5[%c0_18, %c0_19, %c0_20] : memref<2x1x96xf32, #tpu.memory_space<vmem>>, vector<1x1x96xf32>
    %36 = vector.shape_cast %35 : vector<1x1x96xf32> to vector<1x96xf32>
    %37 = vector.broadcast %36 : vector<1x96xf32> to vector<16x96xf32>
    %38 = arith.addf %34, %37 : vector<16x96xf32>
    %39 = arith.truncf %38 : vector<16x96xf32> to vector<16x96xbf16>
    %40 = vector.extract_strided_slice %39 {offsets = [0, 0], sizes = [16, 16], strides = [1, 1]} : vector<16x96xbf16> to vector<16x16xbf16>
    %41 = vector.shape_cast %40 : vector<16x16xbf16> to vector<2x8x16xbf16>
    %42 = vector.extract_strided_slice %39 {offsets = [0, 32], sizes = [16, 16], strides = [1, 1]} : vector<16x96xbf16> to vector<16x16xbf16>
    %43 = vector.shape_cast %42 : vector<16x16xbf16> to vector<2x8x16xbf16>
    %44 = vector.extract_strided_slice %39 {offsets = [0, 64], sizes = [16, 16], strides = [1, 1]} : vector<16x96xbf16> to vector<16x16xbf16>
    %45 = vector.shape_cast %44 : vector<16x16xbf16> to vector<2x8x16xbf16>
    "tpu.trace_start"() <{level = 10 : i32, message = "bqd,bkd->bqk"}> : () -> ()
    %cst_21 = arith.constant dense<0.000000e+00> : vector<2x8x8xf32>
    %46 = tpu.matmul %41, %43, %cst_21 {dimension_numbers = #tpu.dot_dimension_numbers<[2], [2], [1], [1], [0, 0, 0, 1, 1, 1], [0], [0]>} : vector<2x8x16xbf16>, vector<2x8x16xbf16>, vector<2x8x8xf32> -> vector<2x8x8xf32>
    "tpu.trace_stop"() : () -> ()
    %cst_22 = arith.constant 2.500000e-01 : f32
    %47 = vector.broadcast %cst_22 : f32 to vector<2x8x8xf32>
    %48 = arith.mulf %46, %47 : vector<2x8x8xf32>
    %49 = vector.broadcast %4 : vector<2x1x8xf32> to vector<2x8x8xf32>
    %50 = arith.addf %48, %49 : vector<2x8x8xf32>
    %cst_23 = arith.constant dense<0xFF800000> : vector<2x8xf32>
    %51 = vector.multi_reduction <maximumf>, %50, %cst_23 [2] : vector<2x8x8xf32> to vector<2x8xf32>
    %52 = vector.shape_cast %51 : vector<2x8xf32> to vector<2x8x1xf32>
    %53 = vector.broadcast %52 : vector<2x8x1xf32> to vector<2x8x8xf32>
    %54 = arith.subf %50, %53 : vector<2x8x8xf32>
    %55 = math.exp %54 : vector<2x8x8xf32>
    %cst_24 = arith.constant dense<0.000000e+00> : vector<2x8xf32>
    %56 = vector.multi_reduction <add>, %55, %cst_24 [2] : vector<2x8x8xf32> to vector<2x8xf32>
    %57 = vector.shape_cast %56 : vector<2x8xf32> to vector<2x8x1xf32>
    %58 = tpu.reciprocal %57 {approx = true} : vector<2x8x1xf32> -> vector<2x8x1xf32>
    %59 = vector.broadcast %58 : vector<2x8x1xf32> to vector<2x8x8xf32>
    %60 = arith.mulf %55, %59 : vector<2x8x8xf32>
    %61 = arith.truncf %60 : vector<2x8x8xf32> to vector<2x8x8xbf16>
    "tpu.trace_start"() <{level = 10 : i32, message = "bqk,bkd->bqd"}> : () -> ()
    %cst_25 = arith.constant dense<0.000000e+00> : vector<2x8x16xf32>
    %62 = tpu.matmul %61, %45, %cst_25 {dimension_numbers = #tpu.dot_dimension_numbers<[2], [1], [1], [2], [0, 0, 0, 1, 1, 2], [0], [0]>} : vector<2x8x8xbf16>, vector<2x8x16xbf16>, vector<2x8x16xf32> -> vector<2x8x16xf32>
    "tpu.trace_stop"() : () -> ()
    %63 = vector.shape_cast %62 : vector<2x8x16xf32> to vector<16x16xf32>
    %64 = vector.extract_strided_slice %39 {offsets = [0, 16], sizes = [16, 16], strides = [1, 1]} : vector<16x96xbf16> to vector<16x16xbf16>
    %65 = vector.shape_cast %64 : vector<16x16xbf16> to vector<2x8x16xbf16>
    %66 = vector.extract_strided_slice %39 {offsets = [0, 48], sizes = [16, 16], strides = [1, 1]} : vector<16x96xbf16> to vector<16x16xbf16>
    %67 = vector.shape_cast %66 : vector<16x16xbf16> to vector<2x8x16xbf16>
    %68 = vector.extract_strided_slice %39 {offsets = [0, 80], sizes = [16, 16], strides = [1, 1]} : vector<16x96xbf16> to vector<16x16xbf16>
    %69 = vector.shape_cast %68 : vector<16x16xbf16> to vector<2x8x16xbf16>
    "tpu.trace_start"() <{level = 10 : i32, message = "bqd,bkd->bqk"}> : () -> ()
    %cst_26 = arith.constant dense<0.000000e+00> : vector<2x8x8xf32>
    %70 = tpu.matmul %65, %67, %cst_26 {dimension_numbers = #tpu.dot_dimension_numbers<[2], [2], [1], [1], [0, 0, 0, 1, 1, 1], [0], [0]>} : vector<2x8x16xbf16>, vector<2x8x16xbf16>, vector<2x8x8xf32> -> vector<2x8x8xf32>
    "tpu.trace_stop"() : () -> ()
    %cst_27 = arith.constant 2.500000e-01 : f32
    %71 = vector.broadcast %cst_27 : f32 to vector<2x8x8xf32>
    %72 = arith.mulf %70, %71 : vector<2x8x8xf32>
    %73 = vector.broadcast %4 : vector<2x1x8xf32> to vector<2x8x8xf32>
    %74 = arith.addf %72, %73 : vector<2x8x8xf32>
    %cst_28 = arith.constant dense<0xFF800000> : vector<2x8xf32>
    %75 = vector.multi_reduction <maximumf>, %74, %cst_28 [2] : vector<2x8x8xf32> to vector<2x8xf32>
    %76 = vector.shape_cast %75 : vector<2x8xf32> to vector<2x8x1xf32>
    %77 = vector.broadcast %76 : vector<2x8x1xf32> to vector<2x8x8xf32>
    %78 = arith.subf %74, %77 : vector<2x8x8xf32>
    %79 = math.exp %78 : vector<2x8x8xf32>
    %cst_29 = arith.constant dense<0.000000e+00> : vector<2x8xf32>
    %80 = vector.multi_reduction <add>, %79, %cst_29 [2] : vector<2x8x8xf32> to vector<2x8xf32>
    %81 = vector.shape_cast %80 : vector<2x8xf32> to vector<2x8x1xf32>
    %82 = tpu.reciprocal %81 {approx = true} : vector<2x8x1xf32> -> vector<2x8x1xf32>
    %83 = vector.broadcast %82 : vector<2x8x1xf32> to vector<2x8x8xf32>
    %84 = arith.mulf %79, %83 : vector<2x8x8xf32>
    %85 = arith.truncf %84 : vector<2x8x8xf32> to vector<2x8x8xbf16>
    "tpu.trace_start"() <{level = 10 : i32, message = "bqk,bkd->bqd"}> : () -> ()
    %cst_30 = arith.constant dense<0.000000e+00> : vector<2x8x16xf32>
    %86 = tpu.matmul %85, %69, %cst_30 {dimension_numbers = #tpu.dot_dimension_numbers<[2], [1], [1], [2], [0, 0, 0, 1, 1, 2], [0], [0]>} : vector<2x8x8xbf16>, vector<2x8x16xbf16>, vector<2x8x16xf32> -> vector<2x8x16xf32>
    "tpu.trace_stop"() : () -> ()
    %87 = vector.shape_cast %86 : vector<2x8x16xf32> to vector<16x16xf32>
    %88 = tpu.concatenate %63, %87 in 1 : vector<16x16xf32>, vector<16x16xf32> -> vector<16x32xf32>
    %89 = arith.truncf %88 : vector<16x32xf32> to vector<16x32xbf16>
    %c0_31 = arith.constant 0 : index
    %c0_32 = arith.constant 0 : index
    %c0_33 = arith.constant 0 : index
    %90 = vector.load %arg6[%c0_31, %c0_32, %c0_33] : memref<2x32x32xbf16, #tpu.memory_space<vmem>>, vector<1x32x32xbf16>
    %91 = vector.shape_cast %90 : vector<1x32x32xbf16> to vector<32x32xbf16>
    %cst_34 = arith.constant dense<0.000000e+00> : vector<16x32xf32>
    %92 = tpu.matmul %89, %91, %cst_34 {dimension_numbers = #tpu.dot_dimension_numbers<[1], [0], [0], [1], [0, 0, 1, 1], [], []>} : vector<16x32xbf16>, vector<32x32xbf16>, vector<16x32xf32> -> vector<16x32xf32>
    %c0_35 = arith.constant 0 : index
    %c0_36 = arith.constant 0 : index
    %c0_37 = arith.constant 0 : index
    %93 = vector.load %arg7[%c0_35, %c0_36, %c0_37] : memref<2x1x32xf32, #tpu.memory_space<vmem>>, vector<1x1x32xf32>
    %94 = vector.shape_cast %93 : vector<1x1x32xf32> to vector<1x32xf32>
    %95 = vector.broadcast %94 : vector<1x32xf32> to vector<16x32xf32>
    %96 = arith.addf %92, %95 : vector<16x32xf32>
    %97 = arith.addf %30, %96 : vector<16x32xf32>
    %c0_38 = arith.constant 0 : index
    %c0_39 = arith.constant 0 : index
    %c0_40 = arith.constant 0 : index
    %98 = vector.load %arg8[%c0_38, %c0_39, %c0_40] : memref<2x1x32xf32, #tpu.memory_space<vmem>>, vector<1x1x32xf32>
    %99 = vector.shape_cast %98 : vector<1x1x32xf32> to vector<1x32xf32>
    %c0_41 = arith.constant 0 : index
    %c0_42 = arith.constant 0 : index
    %c0_43 = arith.constant 0 : index
    %100 = vector.load %arg9[%c0_41, %c0_42, %c0_43] : memref<2x1x32xf32, #tpu.memory_space<vmem>>, vector<1x1x32xf32>
    %101 = vector.shape_cast %100 : vector<1x1x32xf32> to vector<1x32xf32>
    %cst_44 = arith.constant dense<0.000000e+00> : vector<16xf32>
    %102 = vector.multi_reduction <add>, %97, %cst_44 [1] : vector<16x32xf32> to vector<16xf32>
    %103 = vector.shape_cast %102 : vector<16xf32> to vector<16x1xf32>
    %cst_45 = arith.constant 3.200000e+01 : f32
    %104 = vector.broadcast %cst_45 : f32 to vector<16x1xf32>
    %105 = arith.divf %103, %104 : vector<16x1xf32>
    %106 = vector.broadcast %105 : vector<16x1xf32> to vector<16x32xf32>
    %107 = arith.subf %97, %106 : vector<16x32xf32>
    %108 = arith.mulf %107, %107 : vector<16x32xf32>
    %cst_46 = arith.constant dense<0.000000e+00> : vector<16xf32>
    %109 = vector.multi_reduction <add>, %108, %cst_46 [1] : vector<16x32xf32> to vector<16xf32>
    %110 = vector.shape_cast %109 : vector<16xf32> to vector<16x1xf32>
    %cst_47 = arith.constant 3.200000e+01 : f32
    %111 = vector.broadcast %cst_47 : f32 to vector<16x1xf32>
    %112 = arith.divf %110, %111 : vector<16x1xf32>
    %113 = vector.broadcast %105 : vector<16x1xf32> to vector<16x32xf32>
    %114 = arith.subf %97, %113 : vector<16x32xf32>
    %cst_48 = arith.constant 9.99999996E-13 : f32
    %115 = vector.broadcast %cst_48 : f32 to vector<16x1xf32>
    %116 = arith.addf %112, %115 : vector<16x1xf32>
    %117 = math.rsqrt %116 : vector<16x1xf32>
    %118 = vector.broadcast %117 : vector<16x1xf32> to vector<16x32xf32>
    %119 = arith.mulf %114, %118 : vector<16x32xf32>
    %120 = vector.broadcast %99 : vector<1x32xf32> to vector<16x32xf32>
    %121 = arith.mulf %119, %120 : vector<16x32xf32>
    %122 = vector.broadcast %101 : vector<1x32xf32> to vector<16x32xf32>
    %123 = arith.addf %121, %122 : vector<16x32xf32>
    %124 = arith.truncf %123 : vector<16x32xf32> to vector<16x32xbf16>
    %c0_49 = arith.constant 0 : index
    %c0_50 = arith.constant 0 : index
    %c0_51 = arith.constant 0 : index
    %125 = vector.load %arg10[%c0_49, %c0_50, %c0_51] : memref<2x32x64xbf16, #tpu.memory_space<vmem>>, vector<1x32x64xbf16>
    %126 = vector.shape_cast %125 : vector<1x32x64xbf16> to vector<32x64xbf16>
    %cst_52 = arith.constant dense<0.000000e+00> : vector<16x64xf32>
    %127 = tpu.matmul %124, %126, %cst_52 {dimension_numbers = #tpu.dot_dimension_numbers<[1], [0], [0], [1], [0, 0, 1, 1], [], []>} : vector<16x32xbf16>, vector<32x64xbf16>, vector<16x64xf32> -> vector<16x64xf32>
    %c0_53 = arith.constant 0 : index
    %c0_54 = arith.constant 0 : index
    %c0_55 = arith.constant 0 : index
    %128 = vector.load %arg11[%c0_53, %c0_54, %c0_55] : memref<2x1x64xf32, #tpu.memory_space<vmem>>, vector<1x1x64xf32>
    %129 = vector.shape_cast %128 : vector<1x1x64xf32> to vector<1x64xf32>
    %130 = vector.broadcast %129 : vector<1x64xf32> to vector<16x64xf32>
    %131 = arith.addf %127, %130 : vector<16x64xf32>
    %cst_56 = arith.constant 5.000000e-01 : f32
    %132 = vector.broadcast %cst_56 : f32 to vector<16x64xf32>
    %133 = arith.mulf %132, %131 : vector<16x64xf32>
    %cst_57 = arith.constant 4.471500e-02 : f32
    %134 = vector.broadcast %cst_57 : f32 to vector<16x64xf32>
    %135 = arith.mulf %134, %131 : vector<16x64xf32>
    %136 = arith.mulf %135, %131 : vector<16x64xf32>
    %137 = arith.mulf %136, %131 : vector<16x64xf32>
    %138 = arith.addf %131, %137 : vector<16x64xf32>
    %cst_58 = arith.constant 0.797884583 : f32
    %139 = vector.broadcast %cst_58 : f32 to vector<16x64xf32>
    %140 = arith.mulf %139, %138 : vector<16x64xf32>
    %141 = math.tanh %140 : vector<16x64xf32>
    %cst_59 = arith.constant 1.000000e+00 : f32
    %142 = vector.broadcast %cst_59 : f32 to vector<16x64xf32>
    %143 = arith.addf %142, %141 : vector<16x64xf32>
    %144 = arith.mulf %133, %143 : vector<16x64xf32>
    %145 = arith.truncf %144 : vector<16x64xf32> to vector<16x64xbf16>
    %c0_60 = arith.constant 0 : index
    %c0_61 = arith.constant 0 : index
    %c0_62 = arith.constant 0 : index
    %146 = vector.load %arg12[%c0_60, %c0_61, %c0_62] : memref<2x64x32xbf16, #tpu.memory_space<vmem>>, vector<1x64x32xbf16>
    %147 = vector.shape_cast %146 : vector<1x64x32xbf16> to vector<64x32xbf16>
    %cst_63 = arith.constant dense<0.000000e+00> : vector<16x32xf32>
    %148 = tpu.matmul %145, %147, %cst_63 {dimension_numbers = #tpu.dot_dimension_numbers<[1], [0], [0], [1], [0, 0, 1, 1], [], []>} : vector<16x64xbf16>, vector<64x32xbf16>, vector<16x32xf32> -> vector<16x32xf32>
    %c0_64 = arith.constant 0 : index
    %c0_65 = arith.constant 0 : index
    %c0_66 = arith.constant 0 : index
    %149 = vector.load %arg13[%c0_64, %c0_65, %c0_66] : memref<2x1x32xf32, #tpu.memory_space<vmem>>, vector<1x1x32xf32>
    %150 = vector.shape_cast %149 : vector<1x1x32xf32> to vector<1x32xf32>
    %151 = vector.broadcast %150 : vector<1x32xf32> to vector<16x32xf32>
    %152 = arith.addf %148, %151 : vector<16x32xf32>
    %153 = arith.addf %123, %152 : vector<16x32xf32>
    %c0_67 = arith.constant 0 : index
    %c0_68 = arith.constant 0 : index
    %c0_69 = arith.constant 0 : index
    %154 = vector.load %arg14[%c0_67, %c0_68, %c0_69] : memref<2x1x32xf32, #tpu.memory_space<vmem>>, vector<1x1x32xf32>
    %155 = vector.shape_cast %154 : vector<1x1x32xf32> to vector<1x32xf32>
    %c0_70 = arith.constant 0 : index
    %c0_71 = arith.constant 0 : index
    %c0_72 = arith.constant 0 : index
    %156 = vector.load %arg15[%c0_70, %c0_71, %c0_72] : memref<2x1x32xf32, #tpu.memory_space<vmem>>, vector<1x1x32xf32>
    %157 = vector.shape_cast %156 : vector<1x1x32xf32> to vector<1x32xf32>
    %cst_73 = arith.constant dense<0.000000e+00> : vector<16xf32>
    %158 = vector.multi_reduction <add>, %153, %cst_73 [1] : vector<16x32xf32> to vector<16xf32>
    %159 = vector.shape_cast %158 : vector<16xf32> to vector<16x1xf32>
    %cst_74 = arith.constant 3.200000e+01 : f32
    %160 = vector.broadcast %cst_74 : f32 to vector<16x1xf32>
    %161 = arith.divf %159, %160 : vector<16x1xf32>
    %162 = vector.broadcast %161 : vector<16x1xf32> to vector<16x32xf32>
    %163 = arith.subf %153, %162 : vector<16x32xf32>
    %164 = arith.mulf %163, %163 : vector<16x32xf32>
    %cst_75 = arith.constant dense<0.000000e+00> : vector<16xf32>
    %165 = vector.multi_reduction <add>, %164, %cst_75 [1] : vector<16x32xf32> to vector<16xf32>
    %166 = vector.shape_cast %165 : vector<16xf32> to vector<16x1xf32>
    %cst_76 = arith.constant 3.200000e+01 : f32
    %167 = vector.broadcast %cst_76 : f32 to vector<16x1xf32>
    %168 = arith.divf %166, %167 : vector<16x1xf32>
    %169 = vector.broadcast %161 : vector<16x1xf32> to vector<16x32xf32>
    %170 = arith.subf %153, %169 : vector<16x32xf32>
    %cst_77 = arith.constant 9.99999996E-13 : f32
    %171 = vector.broadcast %cst_77 : f32 to vector<16x1xf32>
    %172 = arith.addf %168, %171 : vector<16x1xf32>
    %173 = math.rsqrt %172 : vector<16x1xf32>
    %174 = vector.broadcast %173 : vector<16x1xf32> to vector<16x32xf32>
    %175 = arith.mulf %170, %174 : vector<16x32xf32>
    %176 = vector.broadcast %155 : vector<1x32xf32> to vector<16x32xf32>
    %177 = arith.mulf %175, %176 : vector<16x32xf32>
    %178 = vector.broadcast %157 : vector<1x32xf32> to vector<16x32xf32>
    %179 = arith.addf %177, %178 : vector<16x32xf32>
    %180 = arith.truncf %179 : vector<16x32xf32> to vector<16x32xbf16>
    %c1 = arith.constant 1 : index
    %c0_78 = arith.constant 0 : index
    %c0_79 = arith.constant 0 : index
    %181 = vector.load %arg4[%c1, %c0_78, %c0_79] : memref<2x32x96xbf16, #tpu.memory_space<vmem>>, vector<1x32x96xbf16>
    %182 = vector.shape_cast %181 : vector<1x32x96xbf16> to vector<32x96xbf16>
    %cst_80 = arith.constant dense<0.000000e+00> : vector<16x96xf32>
    %183 = tpu.matmul %180, %182, %cst_80 {dimension_numbers = #tpu.dot_dimension_numbers<[1], [0], [0], [1], [0, 0, 1, 1], [], []>} : vector<16x32xbf16>, vector<32x96xbf16>, vector<16x96xf32> -> vector<16x96xf32>
    %c1_81 = arith.constant 1 : index
    %c0_82 = arith.constant 0 : index
    %c0_83 = arith.constant 0 : index
    %184 = vector.load %arg5[%c1_81, %c0_82, %c0_83] : memref<2x1x96xf32, #tpu.memory_space<vmem>>, vector<1x1x96xf32>
    %185 = vector.shape_cast %184 : vector<1x1x96xf32> to vector<1x96xf32>
    %186 = vector.broadcast %185 : vector<1x96xf32> to vector<16x96xf32>
    %187 = arith.addf %183, %186 : vector<16x96xf32>
    %188 = arith.truncf %187 : vector<16x96xf32> to vector<16x96xbf16>
    %189 = vector.extract_strided_slice %188 {offsets = [0, 0], sizes = [16, 16], strides = [1, 1]} : vector<16x96xbf16> to vector<16x16xbf16>
    %190 = vector.shape_cast %189 : vector<16x16xbf16> to vector<2x8x16xbf16>
    %191 = vector.extract_strided_slice %188 {offsets = [0, 32], sizes = [16, 16], strides = [1, 1]} : vector<16x96xbf16> to vector<16x16xbf16>
    %192 = vector.shape_cast %191 : vector<16x16xbf16> to vector<2x8x16xbf16>
    %193 = vector.extract_strided_slice %188 {offsets = [0, 64], sizes = [16, 16], strides = [1, 1]} : vector<16x96xbf16> to vector<16x16xbf16>
    %194 = vector.shape_cast %193 : vector<16x16xbf16> to vector<2x8x16xbf16>
    "tpu.trace_start"() <{level = 10 : i32, message = "bqd,bkd->bqk"}> : () -> ()
    %cst_84 = arith.constant dense<0.000000e+00> : vector<2x8x8xf32>
    %195 = tpu.matmul %190, %192, %cst_84 {dimension_numbers = #tpu.dot_dimension_numbers<[2], [2], [1], [1], [0, 0, 0, 1, 1, 1], [0], [0]>} : vector<2x8x16xbf16>, vector<2x8x16xbf16>, vector<2x8x8xf32> -> vector<2x8x8xf32>
    "tpu.trace_stop"() : () -> ()
    %cst_85 = arith.constant 2.500000e-01 : f32
    %196 = vector.broadcast %cst_85 : f32 to vector<2x8x8xf32>
    %197 = arith.mulf %195, %196 : vector<2x8x8xf32>
    %198 = vector.broadcast %4 : vector<2x1x8xf32> to vector<2x8x8xf32>
    %199 = arith.addf %197, %198 : vector<2x8x8xf32>
    %cst_86 = arith.constant dense<0xFF800000> : vector<2x8xf32>
    %200 = vector.multi_reduction <maximumf>, %199, %cst_86 [2] : vector<2x8x8xf32> to vector<2x8xf32>
    %201 = vector.shape_cast %200 : vector<2x8xf32> to vector<2x8x1xf32>
    %202 = vector.broadcast %201 : vector<2x8x1xf32> to vector<2x8x8xf32>
    %203 = arith.subf %199, %202 : vector<2x8x8xf32>
    %204 = math.exp %203 : vector<2x8x8xf32>
    %cst_87 = arith.constant dense<0.000000e+00> : vector<2x8xf32>
    %205 = vector.multi_reduction <add>, %204, %cst_87 [2] : vector<2x8x8xf32> to vector<2x8xf32>
    %206 = vector.shape_cast %205 : vector<2x8xf32> to vector<2x8x1xf32>
    %207 = tpu.reciprocal %206 {approx = true} : vector<2x8x1xf32> -> vector<2x8x1xf32>
    %208 = vector.broadcast %207 : vector<2x8x1xf32> to vector<2x8x8xf32>
    %209 = arith.mulf %204, %208 : vector<2x8x8xf32>
    %210 = arith.truncf %209 : vector<2x8x8xf32> to vector<2x8x8xbf16>
    "tpu.trace_start"() <{level = 10 : i32, message = "bqk,bkd->bqd"}> : () -> ()
    %cst_88 = arith.constant dense<0.000000e+00> : vector<2x8x16xf32>
    %211 = tpu.matmul %210, %194, %cst_88 {dimension_numbers = #tpu.dot_dimension_numbers<[2], [1], [1], [2], [0, 0, 0, 1, 1, 2], [0], [0]>} : vector<2x8x8xbf16>, vector<2x8x16xbf16>, vector<2x8x16xf32> -> vector<2x8x16xf32>
    "tpu.trace_stop"() : () -> ()
    %212 = vector.shape_cast %211 : vector<2x8x16xf32> to vector<16x16xf32>
    %213 = vector.extract_strided_slice %188 {offsets = [0, 16], sizes = [16, 16], strides = [1, 1]} : vector<16x96xbf16> to vector<16x16xbf16>
    %214 = vector.shape_cast %213 : vector<16x16xbf16> to vector<2x8x16xbf16>
    %215 = vector.extract_strided_slice %188 {offsets = [0, 48], sizes = [16, 16], strides = [1, 1]} : vector<16x96xbf16> to vector<16x16xbf16>
    %216 = vector.shape_cast %215 : vector<16x16xbf16> to vector<2x8x16xbf16>
    %217 = vector.extract_strided_slice %188 {offsets = [0, 80], sizes = [16, 16], strides = [1, 1]} : vector<16x96xbf16> to vector<16x16xbf16>
    %218 = vector.shape_cast %217 : vector<16x16xbf16> to vector<2x8x16xbf16>
    "tpu.trace_start"() <{level = 10 : i32, message = "bqd,bkd->bqk"}> : () -> ()
    %cst_89 = arith.constant dense<0.000000e+00> : vector<2x8x8xf32>
    %219 = tpu.matmul %214, %216, %cst_89 {dimension_numbers = #tpu.dot_dimension_numbers<[2], [2], [1], [1], [0, 0, 0, 1, 1, 1], [0], [0]>} : vector<2x8x16xbf16>, vector<2x8x16xbf16>, vector<2x8x8xf32> -> vector<2x8x8xf32>
    "tpu.trace_stop"() : () -> ()
    %cst_90 = arith.constant 2.500000e-01 : f32
    %220 = vector.broadcast %cst_90 : f32 to vector<2x8x8xf32>
    %221 = arith.mulf %219, %220 : vector<2x8x8xf32>
    %222 = vector.broadcast %4 : vector<2x1x8xf32> to vector<2x8x8xf32>
    %223 = arith.addf %221, %222 : vector<2x8x8xf32>
    %cst_91 = arith.constant dense<0xFF800000> : vector<2x8xf32>
    %224 = vector.multi_reduction <maximumf>, %223, %cst_91 [2] : vector<2x8x8xf32> to vector<2x8xf32>
    %225 = vector.shape_cast %224 : vector<2x8xf32> to vector<2x8x1xf32>
    %226 = vector.broadcast %225 : vector<2x8x1xf32> to vector<2x8x8xf32>
    %227 = arith.subf %223, %226 : vector<2x8x8xf32>
    %228 = math.exp %227 : vector<2x8x8xf32>
    %cst_92 = arith.constant dense<0.000000e+00> : vector<2x8xf32>
    %229 = vector.multi_reduction <add>, %228, %cst_92 [2] : vector<2x8x8xf32> to vector<2x8xf32>
    %230 = vector.shape_cast %229 : vector<2x8xf32> to vector<2x8x1xf32>
    %231 = tpu.reciprocal %230 {approx = true} : vector<2x8x1xf32> -> vector<2x8x1xf32>
    %232 = vector.broadcast %231 : vector<2x8x1xf32> to vector<2x8x8xf32>
    %233 = arith.mulf %228, %232 : vector<2x8x8xf32>
    %234 = arith.truncf %233 : vector<2x8x8xf32> to vector<2x8x8xbf16>
    "tpu.trace_start"() <{level = 10 : i32, message = "bqk,bkd->bqd"}> : () -> ()
    %cst_93 = arith.constant dense<0.000000e+00> : vector<2x8x16xf32>
    %235 = tpu.matmul %234, %218, %cst_93 {dimension_numbers = #tpu.dot_dimension_numbers<[2], [1], [1], [2], [0, 0, 0, 1, 1, 2], [0], [0]>} : vector<2x8x8xbf16>, vector<2x8x16xbf16>, vector<2x8x16xf32> -> vector<2x8x16xf32>
    "tpu.trace_stop"() : () -> ()
    %236 = vector.shape_cast %235 : vector<2x8x16xf32> to vector<16x16xf32>
    %237 = tpu.concatenate %212, %236 in 1 : vector<16x16xf32>, vector<16x16xf32> -> vector<16x32xf32>
    %238 = arith.truncf %237 : vector<16x32xf32> to vector<16x32xbf16>
    %c1_94 = arith.constant 1 : index
    %c0_95 = arith.constant 0 : index
    %c0_96 = arith.constant 0 : index
    %239 = vector.load %arg6[%c1_94, %c0_95, %c0_96] : memref<2x32x32xbf16, #tpu.memory_space<vmem>>, vector<1x32x32xbf16>
    %240 = vector.shape_cast %239 : vector<1x32x32xbf16> to vector<32x32xbf16>
    %cst_97 = arith.constant dense<0.000000e+00> : vector<16x32xf32>
    %241 = tpu.matmul %238, %240, %cst_97 {dimension_numbers = #tpu.dot_dimension_numbers<[1], [0], [0], [1], [0, 0, 1, 1], [], []>} : vector<16x32xbf16>, vector<32x32xbf16>, vector<16x32xf32> -> vector<16x32xf32>
    %c1_98 = arith.constant 1 : index
    %c0_99 = arith.constant 0 : index
    %c0_100 = arith.constant 0 : index
    %242 = vector.load %arg7[%c1_98, %c0_99, %c0_100] : memref<2x1x32xf32, #tpu.memory_space<vmem>>, vector<1x1x32xf32>
    %243 = vector.shape_cast %242 : vector<1x1x32xf32> to vector<1x32xf32>
    %244 = vector.broadcast %243 : vector<1x32xf32> to vector<16x32xf32>
    %245 = arith.addf %241, %244 : vector<16x32xf32>
    %246 = arith.addf %179, %245 : vector<16x32xf32>
    %c1_101 = arith.constant 1 : index
    %c0_102 = arith.constant 0 : index
    %c0_103 = arith.constant 0 : index
    %247 = vector.load %arg8[%c1_101, %c0_102, %c0_103] : memref<2x1x32xf32, #tpu.memory_space<vmem>>, vector<1x1x32xf32>
    %248 = vector.shape_cast %247 : vector<1x1x32xf32> to vector<1x32xf32>
    %c1_104 = arith.constant 1 : index
    %c0_105 = arith.constant 0 : index
    %c0_106 = arith.constant 0 : index
    %249 = vector.load %arg9[%c1_104, %c0_105, %c0_106] : memref<2x1x32xf32, #tpu.memory_space<vmem>>, vector<1x1x32xf32>
    %250 = vector.shape_cast %249 : vector<1x1x32xf32> to vector<1x32xf32>
    %cst_107 = arith.constant dense<0.000000e+00> : vector<16xf32>
    %251 = vector.multi_reduction <add>, %246, %cst_107 [1] : vector<16x32xf32> to vector<16xf32>
    %252 = vector.shape_cast %251 : vector<16xf32> to vector<16x1xf32>
    %cst_108 = arith.constant 3.200000e+01 : f32
    %253 = vector.broadcast %cst_108 : f32 to vector<16x1xf32>
    %254 = arith.divf %252, %253 : vector<16x1xf32>
    %255 = vector.broadcast %254 : vector<16x1xf32> to vector<16x32xf32>
    %256 = arith.subf %246, %255 : vector<16x32xf32>
    %257 = arith.mulf %256, %256 : vector<16x32xf32>
    %cst_109 = arith.constant dense<0.000000e+00> : vector<16xf32>
    %258 = vector.multi_reduction <add>, %257, %cst_109 [1] : vector<16x32xf32> to vector<16xf32>
    %259 = vector.shape_cast %258 : vector<16xf32> to vector<16x1xf32>
    %cst_110 = arith.constant 3.200000e+01 : f32
    %260 = vector.broadcast %cst_110 : f32 to vector<16x1xf32>
    %261 = arith.divf %259, %260 : vector<16x1xf32>
    %262 = vector.broadcast %254 : vector<16x1xf32> to vector<16x32xf32>
    %263 = arith.subf %246, %262 : vector<16x32xf32>
    %cst_111 = arith.constant 9.99999996E-13 : f32
    %264 = vector.broadcast %cst_111 : f32 to vector<16x1xf32>
    %265 = arith.addf %261, %264 : vector<16x1xf32>
    %266 = math.rsqrt %265 : vector<16x1xf32>
    %267 = vector.broadcast %266 : vector<16x1xf32> to vector<16x32xf32>
    %268 = arith.mulf %263, %267 : vector<16x32xf32>
    %269 = vector.broadcast %248 : vector<1x32xf32> to vector<16x32xf32>
    %270 = arith.mulf %268, %269 : vector<16x32xf32>
    %271 = vector.broadcast %250 : vector<1x32xf32> to vector<16x32xf32>
    %272 = arith.addf %270, %271 : vector<16x32xf32>
    %273 = arith.truncf %272 : vector<16x32xf32> to vector<16x32xbf16>
    %c1_112 = arith.constant 1 : index
    %c0_113 = arith.constant 0 : index
    %c0_114 = arith.constant 0 : index
    %274 = vector.load %arg10[%c1_112, %c0_113, %c0_114] : memref<2x32x64xbf16, #tpu.memory_space<vmem>>, vector<1x32x64xbf16>
    %275 = vector.shape_cast %274 : vector<1x32x64xbf16> to vector<32x64xbf16>
    %cst_115 = arith.constant dense<0.000000e+00> : vector<16x64xf32>
    %276 = tpu.matmul %273, %275, %cst_115 {dimension_numbers = #tpu.dot_dimension_numbers<[1], [0], [0], [1], [0, 0, 1, 1], [], []>} : vector<16x32xbf16>, vector<32x64xbf16>, vector<16x64xf32> -> vector<16x64xf32>
    %c1_116 = arith.constant 1 : index
    %c0_117 = arith.constant 0 : index
    %c0_118 = arith.constant 0 : index
    %277 = vector.load %arg11[%c1_116, %c0_117, %c0_118] : memref<2x1x64xf32, #tpu.memory_space<vmem>>, vector<1x1x64xf32>
    %278 = vector.shape_cast %277 : vector<1x1x64xf32> to vector<1x64xf32>
    %279 = vector.broadcast %278 : vector<1x64xf32> to vector<16x64xf32>
    %280 = arith.addf %276, %279 : vector<16x64xf32>
    %cst_119 = arith.constant 5.000000e-01 : f32
    %281 = vector.broadcast %cst_119 : f32 to vector<16x64xf32>
    %282 = arith.mulf %281, %280 : vector<16x64xf32>
    %cst_120 = arith.constant 4.471500e-02 : f32
    %283 = vector.broadcast %cst_120 : f32 to vector<16x64xf32>
    %284 = arith.mulf %283, %280 : vector<16x64xf32>
    %285 = arith.mulf %284, %280 : vector<16x64xf32>
    %286 = arith.mulf %285, %280 : vector<16x64xf32>
    %287 = arith.addf %280, %286 : vector<16x64xf32>
    %cst_121 = arith.constant 0.797884583 : f32
    %288 = vector.broadcast %cst_121 : f32 to vector<16x64xf32>
    %289 = arith.mulf %288, %287 : vector<16x64xf32>
    %290 = math.tanh %289 : vector<16x64xf32>
    %cst_122 = arith.constant 1.000000e+00 : f32
    %291 = vector.broadcast %cst_122 : f32 to vector<16x64xf32>
    %292 = arith.addf %291, %290 : vector<16x64xf32>
    %293 = arith.mulf %282, %292 : vector<16x64xf32>
    %294 = arith.truncf %293 : vector<16x64xf32> to vector<16x64xbf16>
    %c1_123 = arith.constant 1 : index
    %c0_124 = arith.constant 0 : index
    %c0_125 = arith.constant 0 : index
    %295 = vector.load %arg12[%c1_123, %c0_124, %c0_125] : memref<2x64x32xbf16, #tpu.memory_space<vmem>>, vector<1x64x32xbf16>
    %296 = vector.shape_cast %295 : vector<1x64x32xbf16> to vector<64x32xbf16>
    %cst_126 = arith.constant dense<0.000000e+00> : vector<16x32xf32>
    %297 = tpu.matmul %294, %296, %cst_126 {dimension_numbers = #tpu.dot_dimension_numbers<[1], [0], [0], [1], [0, 0, 1, 1], [], []>} : vector<16x64xbf16>, vector<64x32xbf16>, vector<16x32xf32> -> vector<16x32xf32>
    %c1_127 = arith.constant 1 : index
    %c0_128 = arith.constant 0 : index
    %c0_129 = arith.constant 0 : index
    %298 = vector.load %arg13[%c1_127, %c0_128, %c0_129] : memref<2x1x32xf32, #tpu.memory_space<vmem>>, vector<1x1x32xf32>
    %299 = vector.shape_cast %298 : vector<1x1x32xf32> to vector<1x32xf32>
    %300 = vector.broadcast %299 : vector<1x32xf32> to vector<16x32xf32>
    %301 = arith.addf %297, %300 : vector<16x32xf32>
    %302 = arith.addf %272, %301 : vector<16x32xf32>
    %c1_130 = arith.constant 1 : index
    %c0_131 = arith.constant 0 : index
    %c0_132 = arith.constant 0 : index
    %303 = vector.load %arg14[%c1_130, %c0_131, %c0_132] : memref<2x1x32xf32, #tpu.memory_space<vmem>>, vector<1x1x32xf32>
    %304 = vector.shape_cast %303 : vector<1x1x32xf32> to vector<1x32xf32>
    %c1_133 = arith.constant 1 : index
    %c0_134 = arith.constant 0 : index
    %c0_135 = arith.constant 0 : index
    %305 = vector.load %arg15[%c1_133, %c0_134, %c0_135] : memref<2x1x32xf32, #tpu.memory_space<vmem>>, vector<1x1x32xf32>
    %306 = vector.shape_cast %305 : vector<1x1x32xf32> to vector<1x32xf32>
    %cst_136 = arith.constant dense<0.000000e+00> : vector<16xf32>
    %307 = vector.multi_reduction <add>, %302, %cst_136 [1] : vector<16x32xf32> to vector<16xf32>
    %308 = vector.shape_cast %307 : vector<16xf32> to vector<16x1xf32>
    %cst_137 = arith.constant 3.200000e+01 : f32
    %309 = vector.broadcast %cst_137 : f32 to vector<16x1xf32>
    %310 = arith.divf %308, %309 : vector<16x1xf32>
    %311 = vector.broadcast %310 : vector<16x1xf32> to vector<16x32xf32>
    %312 = arith.subf %302, %311 : vector<16x32xf32>
    %313 = arith.mulf %312, %312 : vector<16x32xf32>
    %cst_138 = arith.constant dense<0.000000e+00> : vector<16xf32>
    %314 = vector.multi_reduction <add>, %313, %cst_138 [1] : vector<16x32xf32> to vector<16xf32>
    %315 = vector.shape_cast %314 : vector<16xf32> to vector<16x1xf32>
    %cst_139 = arith.constant 3.200000e+01 : f32
    %316 = vector.broadcast %cst_139 : f32 to vector<16x1xf32>
    %317 = arith.divf %315, %316 : vector<16x1xf32>
    %318 = vector.broadcast %310 : vector<16x1xf32> to vector<16x32xf32>
    %319 = arith.subf %302, %318 : vector<16x32xf32>
    %cst_140 = arith.constant 9.99999996E-13 : f32
    %320 = vector.broadcast %cst_140 : f32 to vector<16x1xf32>
    %321 = arith.addf %317, %320 : vector<16x1xf32>
    %322 = math.rsqrt %321 : vector<16x1xf32>
    %323 = vector.broadcast %322 : vector<16x1xf32> to vector<16x32xf32>
    %324 = arith.mulf %319, %323 : vector<16x32xf32>
    %325 = vector.broadcast %304 : vector<1x32xf32> to vector<16x32xf32>
    %326 = arith.mulf %324, %325 : vector<16x32xf32>
    %327 = vector.broadcast %306 : vector<1x32xf32> to vector<16x32xf32>
    %328 = arith.addf %326, %327 : vector<16x32xf32>
    %329 = vector.shape_cast %328 : vector<16x32xf32> to vector<2x8x32xf32>
    "tpu.trace_start"() <{level = 10 : i32, message = "bqs,bsh->bqh"}> : () -> ()
    %cst_141 = arith.constant dense<0.000000e+00> : vector<2x1x32xf32>
    %330 = tpu.matmul %0, %329, %cst_141 {dimension_numbers = #tpu.dot_dimension_numbers<[2], [1], [1], [2], [0, 0, 0, 1, 1, 2], [0], [0]>} : vector<2x1x8xf32>, vector<2x8x32xf32>, vector<2x1x32xf32> -> vector<2x1x32xf32>
    "tpu.trace_stop"() : () -> ()
    %cst_142 = arith.constant dense<0.000000e+00> : vector<2x1xf32>
    %331 = vector.multi_reduction <add>, %0, %cst_142 [2] : vector<2x1x8xf32> to vector<2x1xf32>
    %332 = vector.shape_cast %331 : vector<2x1xf32> to vector<2x1x1xf32>
    %cst_143 = arith.constant 9.99999971E-10 : f32
    %333 = vector.broadcast %cst_143 : f32 to vector<2x1x1xf32>
    %334 = arith.maximumf %332, %333 : vector<2x1x1xf32>
    %335 = vector.broadcast %334 : vector<2x1x1xf32> to vector<2x1x32xf32>
    %336 = arith.divf %330, %335 : vector<2x1x32xf32>
    %c0_144 = arith.constant 0 : index
    %c0_145 = arith.constant 0 : index
    %c0_146 = arith.constant 0 : index
    %337 = vector.load %arg16[%c0_144, %c0_145, %c0_146] : memref<2x1x32xf32, #tpu.memory_space<vmem>>, vector<2x1x32xf32>
    tpu.vector_store %arg16[%c0_144, %c0_145, %c0_146], %336 {strides = array<i32>} : memref<2x1x32xf32, #tpu.memory_space<vmem>>, vector<2x1x32xf32>,
    return
  }
}

</mosaic_0001>

<bundles_post_ra>
// kernel: wrapper_forward.1
= control target key start
LH: loop header
LB: loop body
LE: loop exit
PB: predicated region body
PF: predicated region fallthrough
CT: control target
= control target key end

     0   :  { %s3013_s0 = inlined_call_operand.vmem [shape: bf16[16,32], index: 0, kind: input, shape index: {}]   ;;  %s3014_s1 = inlined_call_operand.vmem [shape: f32[2,1,8], index: 1, kind: input, shape index: {}]   ;;  %s3015_s2 = inlined_call_operand.vmem [shape: f32[1,32], index: 2, kind: input, shape index: {}]   ;;  %s3016_s3 = inlined_call_operand.vmem [shape: f32[1,32], index: 3, kind: input, shape index: {}]   ;;  %s3017_s4 = inlined_call_operand.vmem [shape: bf16[2,32,96], index: 4, kind: input, shape index: {}]   ;;  %s3018_s5 = inlined_call_operand.vmem [shape: f32[2,1,96], index: 5, kind: input, shape index: {}]   ;;  %s3019_s6 = inlined_call_operand.vmem [shape: bf16[2,32,32], index: 6, kind: input, shape index: {}]   ;;  %s3020_s7 = inlined_call_operand.vmem [shape: f32[2,1,32], index: 7, kind: input, shape index: {}]   ;;  %s3021_s8 = inlined_call_operand.vmem [shape: f32[2,1,32], index: 8, kind: input, shape index: {}]   ;;  %s3022_s9 = inlined_call_operand.vmem [shape: f32[2,1,32], index: 9, kind: input, shape index: {}]   ;;  %s3023_s10 = inlined_call_operand.vmem [shape: bf16[2,32,64], index: 10, kind: input, shape index: {}]   ;;  %s3024_s11 = inlined_call_operand.vmem [shape: f32[2,1,64], index: 11, kind: input, shape index: {}]   ;;  %s3025_s12 = inlined_call_operand.vmem [shape: bf16[2,64,32], index: 12, kind: input, shape index: {}]   ;;  %s3026_s13 = inlined_call_operand.vmem [shape: f32[2,1,32], index: 13, kind: input, shape index: {}]   ;;  %s3027_s14 = inlined_call_operand.vmem [shape: f32[2,1,32], index: 14, kind: input, shape index: {}]   ;;  %s3028_s15 = inlined_call_operand.vmem [shape: f32[2,1,32], index: 15, kind: input, shape index: {}]   ;;  %s3029_s16 = inlined_call_operand.hbm [shape: f32[2,1,32], index: 16, kind: output, shape index: {}]  }
   0x1   :  { %3030 = sst [smem:[#allocation5_spill]] %s3013_s0 }
   0x2   :  { %s3031_s23 = sld [smem:[#allocation5_spill]]  ;;  %vm67_vm0 = vcmask 261120  }
   0x8   :  { %v2134_v0 = vld [vmem:[%s3031_s23] sm:$0xff]  }
   0x9   :  { %v2135_v1 = vunpack.c.l.bf16 %v2134_v0  ;;  %v2136_v2 = vunpack.c.h.bf16 %v2134_v0 }
   0xb   :  { %v68_v3 = vsel %vm67_vm0, %v2135_v1, 0.0  ;;  %v71_v4 = vsel %vm67_vm0, %v2136_v2, 0.0 }
   0xc   :  { %69 = vadd.xlane.f32.xlu0 %v68_v3 }
  0x10   :  { %72 = vadd.xlane.f32.xlu0 %v71_v4 }
  0x11   :  { %21 = vsyncpa [#allocation3], 0  ;;  %v2399_v15 = vld [vmem:[%s3017_s4] sm:$0xff]   ;;  %v2509_v16 = vmov 0.0   ;;  %v2400_v17 = vld [vmem:[%s3017_s4 + $0x8] sm:$0xff]   ;;  %vm2510_vm1 = vmmov 0   ;;  %v286_v48 = vlaneseq }
  0x12   :  { %2201 = vmatprep.subr.bf16.mxu0 %v2509_v16  ;;  %2209 = vmatprep.subr.bf16.mxu1 %v2509_v16  ;;  %v2033_v26 = vld [vmem:[%s3015_s2] ss:$0 sm:$0xff]  ;;  %vm187_vm2 = vcmask 130048   ;;  %v56_v50 = vld [vmem:[%s3014_s1 + $0x1] sm:$0x1]  ;;  %vm298_vm3 = vcmask 64512  }
  0x13   :  { %2202 = vmatpush3.bf16.msra.mxu0 %v2399_v15  ;;  %2205 = vmatprep.mubr.msk.bf16.mxu0 %vm2510_vm1, %v2509_v16  ;;  %v2034_v30 = vld [vmem:[%s3016_s3] ss:$0 sm:$0xff]  ;;  %s2511_s3 = smov 96   ;;  %v287_v52 = vshrl.u32 %v286_v48, 7  ;;  %v58_v53 = vsub.f32 1.0, %v56_v50  ;;  %s2512_s22 = smov 64  }
  0x14   :  { %2203 = vmatprep.subr.bf16.mxu0 %v2509_v16  ;;  %2211 = vmatprep.mubr.msk.bf16.mxu1 %vm2510_vm1, %v2509_v16  ;;  %v2035_v35 = vld [vmem:[%s3018_s5] ss:$0 sm:$0xff]  ;;  %s2513_s23 = smov 80   ;;  %vm328_vm4 = vcmask 1043456   ;;  %s2514_s24 = smov 112   ;;  %vm894_vm5 = vcmask 523264  }
  0x15   :  { %v55_v49 = vld [vmem:[%s3014_s1] sm:$0x1]  ;;  %v288_v55 = vsub.s32 0, %v287_v52  ;;  %v60_v56 = vmul.f32 -10000.0, %v58_v53  ;;  %s2515_s25 = smov 48   ;;  %s2516_s30 = smov 16  }
  0x16   :  { %v57_v51 = vsub.f32 1.0, %v55_v49  ;;  %vm2001_vm6 = vcmask 57344   ;;  %vm2014_vm7 = vcmask 253952  }
  0x17   :  { %2204 = vmatpush3.bf16.msra.mxu0 %v2400_v17  ;;  %v2671_v61 = vrot.slane %v60_v56, %v288_v55 }
  0x18   :  { %2215 = vmatprep.subr.bf16.mxu0 %v2509_v16  ;;  %v59_v54 = vmul.f32 -10000.0, %v57_v51 }
  0x1a   :  { %v2669_v57 = vrot.slane %v59_v54, %v288_v55 }
  0x99   :  { %v70_v5 = vpop.xlane.xlu0 %69 }
  0x9a   :  { %v75_v6 = vmul.f32 0.03125, %v70_v5 }
  0x9c   :  { %v77_v7 = vsub.f32 %v2135_v1, %v75_v6 }
  0x9d   :  { %v73_v8 = vpop.xlane.xlu0 %72 }
  0x9e   :  { %v76_v9 = vmul.f32 0.03125, %v73_v8  ;;  %v79_v10 = vmul.f32 %v77_v7, %v77_v7 }
  0xa0   :  { %v78_v11 = vsub.f32 %v2136_v2, %v76_v9  ;;  %v81_v12 = vsel %vm67_vm0, %v79_v10, 0.0 }
  0xa1   :  { %82 = vadd.xlane.f32.xlu1 %v81_v12 }
  0xa2   :  { %v80_v13 = vmul.f32 %v78_v11, %v78_v11 }
  0xa4   :  { %v84_v14 = vsel %vm67_vm0, %v80_v13, 0.0 }
  0xa5   :  { %85 = vadd.xlane.f32.xlu1 %v84_v14 }
 0x12e   :  { %v83_v18 = vpop.xlane.xlu1 %82 }
 0x12f   :  { %v87_v19 = vmul.f32 0.03125, %v83_v18 }
 0x131   :  { %v89_v20 = vadd.f32 1e-12, %v87_v19 }
 0x132   :  { %v86_v21 = vpop.xlane.xlu1 %85 }
 0x133   :  { %2419 = vrsqrt.f32 %v89_v20  ;;  %v88_v22 = vmul.f32 0.03125, %v86_v21 }
 0x135   :  { %v90_v23 = vadd.f32 1e-12, %v88_v22 }
 0x137   :  { %2421 = vrsqrt.f32 %v90_v23 }
 0x13d   :  { %v2420_v24 = vpop.eup %2419 }
 0x13e   :  { %v93_v25 = vmul.f32 %v2420_v24, %v77_v7 }
 0x140   :  { %v101_v29 = vmul.f32 %v2033_v26, %v93_v25 }
 0x141   :  { %v2422_v27 = vpop.eup %2421 }
 0x142   :  { %v94_v28 = vmul.f32 %v2422_v27, %v78_v11  ;;  %v2631_v32 = vadd.f32 %v2034_v30, %v101_v29 }
 0x144   :  { %v102_v31 = vmul.f32 %v2033_v26, %v94_v28 }
 0x146   :  { %v2633_v33 = vadd.f32 %v2034_v30, %v102_v31 }
 0x148   :  { %v111_v34 = vpack.c.bf16 %v2633_v33, %v2631_v32 }
 0x14a   :  { %2206 = vmatmul.mubr.msk.bf16.vlgmr.msra.gmra.mrb[0].mxu0 %vm67_vm0, %v111_v34 }
 0x14b   :  { %2217 = vmatprep.mubr.msk.bf16.mxu0 %vm2510_vm1, %v2509_v16 }
 0x21d   :  { %v172_v36 = vpop.f32.mrb[0].mxu0 }
 0x21e   :  { %v173_v37 = vadd.f32 %v2035_v35, %v172_v36  ;;  %v2207_v38 = vpop.f32.mrb[1].mxu0 }
 0x21f   :  { %v175_v39 = vpop.f32.mrb[2].mxu0 }
 0x220   :  { %v2643_v40 = vpack.c.bf16 %v173_v37, %v173_v37  ;;  %v176_v41 = vadd.f32 %v2035_v35, %v175_v39  ;;  %v2208_v42 = vpop.f32.mrb[3].mxu0 }
 0x222   :  { %v2645_v43 = vpack.c.bf16 %v176_v41, %v176_v41  ;;  %185 = vrot.lane.b32.xlu0 %v2643_v40, %s2511_s3 }
 0x224   :  { %234 = vrot.lane.b32.xlu1 %v2645_v43, %s2511_s3 }
 0x294   :  { %v186_v44 = vpop.permute.xlu0 %185 }
 0x295   :  { %v192_v45 = vsel %vm187_vm2, %v186_v44, 0 }
 0x296   :  { %2210 = vmatpush3.bf16.xpose.msra.mxu1 %v192_v45  ;;  %v235_v46 = vpop.permute.xlu1 %234 }
 0x297   :  { %v240_v47 = vsel %vm187_vm2, %v235_v46, 0  ;;  %2221 = vmatprep.subr.bf16.mxu1 %v2509_v16 }
 0x298   :  { %2216 = vmatpush3.bf16.xpose.msra.mxu0 %v240_v47 }
 0x299   :  { %2227 = vmatprep.subr.bf16.mxu0 %v2509_v16 }
 0x29d   :  { %2212 = vmatmul.mubr.msk.bf16.vlgmr.msra.gmra.mrb[0].mxu1 %vm187_vm2, %v2643_v40 }
 0x29e   :  { %2223 = vmatprep.mubr.msk.bf16.mxu1 %vm2510_vm1, %v2509_v16 }
 0x29f   :  { %2218 = vmatmul.mubr.msk.bf16.vlgmr.msra.gmra.mrb[4].mxu0 %vm187_vm2, %v2645_v43 }
 0x2a0   :  { %2229 = vmatprep.mubr.msk.bf16.mxu0 %vm2510_vm1, %v2509_v16 }
 0x370   :  { %v228_v58 = vpop.f32.mrb[0].mxu1 }
 0x371   :  { %v282_v59 = vmul.f32 0.25, %v228_v58  ;;  %v2213_v60 = vpop.f32.mrb[1].mxu1 }
 0x372   :  { %v231_v62 = vpop.f32.mrb[2].mxu1  ;;  %v276_v63 = vpop.f32.mrb[4].mxu0 }
 0x373   :  { %v283_v0 = vmul.f32 0.25, %v276_v63  ;;  %v2214_v1 = vpop.f32.mrb[3].mxu1  ;;  %v2219_v2 = vpop.f32.mrb[5].mxu0  ;;  %v296_v3 = vadd.f32 %v2669_v57, %v282_v59 }
 0x374   :  { %v279_v4 = vpop.f32.mrb[6].mxu0 }
 0x375   :  { %v2220_v5 = vpop.f32.mrb[7].mxu0  ;;  %v299_v6 = vsel %vm298_vm3, %v296_v3, -inf  ;;  %v297_v7 = vadd.f32 %v2671_v61, %v283_v0 }
 0x376   :  { %300 = vmax.xlane.f32.xlu1 %v299_v6 }
 0x377   :  { %v302_v8 = vsel %vm298_vm3, %v297_v7, -inf }
 0x378   :  { %303 = vmax.xlane.f32.xlu0 %v302_v8 }
 0x387   :  { %372 = vrot.lane.b32.xlu1 %v2645_v43, %s2512_s22 }
 0x38b   :  { %422 = vrot.lane.b32.xlu1 %v2643_v40, %s2513_s23 }
 0x403   :  { %v301_v9 = vpop.xlane.xlu1 %300 }
 0x404   :  { %v305_v10 = vsub.f32 %v296_v3, %v301_v9 }
 0x405   :  { %v304_v11 = vpop.xlane.xlu0 %303 }
 0x406   :  { %v307_v12 = vmul.f32 1.442695, %v305_v10  ;;  %v306_v13 = vsub.f32 %v297_v7, %v304_v11 }
 0x407   :  { %v373_v14 = vpop.permute.xlu1 %372 }
 0x408   :  { %2423 = vpow2.f32 %v307_v12  ;;  %v309_v15 = vmul.f32 1.442695, %v306_v13  ;;  %v378_v17 = vsel %vm328_vm4, %v373_v14, 0 }
 0x409   :  { %2228 = vmatpush3.bf16.msra.mxu0 %v378_v17 }
 0x40a   :  { %2425 = vpow2.f32 %v309_v15  ;;  %2239 = vmatprep.subr.bf16.mxu0 %v2509_v16 }
 0x40b   :  { %v423_v22 = vpop.permute.xlu1 %422 }
 0x40c   :  { %v428_v35 = vsel %vm187_vm2, %v423_v22, 0 }
 0x412   :  { %v2424_v18 = vpop.eup %2423 }
 0x413   :  { %v311_v19 = vsel %vm298_vm3, %v2424_v18, 0.0 }
 0x414   :  { %v2426_v20 = vpop.eup %2425  ;;  %312 = vadd.xlane.f32.xlu0 %v311_v19 }
 0x415   :  { %v314_v21 = vsel %vm298_vm3, %v2426_v20, 0.0 }
 0x416   :  { %315 = vadd.xlane.f32.xlu1 %v314_v21 }
 0x427   :  { %472 = vrot.lane.b32.xlu1 %v2645_v43, %s2513_s23 }
 0x42a   :  { %323 = vrot.lane.b32.xlu0 %v2643_v40, %s2512_s22 }
 0x42b   :  { %470 = vrot.lane.b32.xlu1 %v2645_v43, %s2514_s24 }
 0x42e   :  { %420 = vrot.lane.b32.xlu0 %v2643_v40, %s2514_s24 }
 0x4a1   :  { %v313_v23 = vpop.xlane.xlu0 %312 }
 0x4a2   :  { %2427 = vrcp.f32 %v313_v23  ;;  %v2401_v23 = vld [vmem:[%s3019_s6] sm:$0xff]  }
 0x4a3   :  { %v316_v24 = vpop.xlane.xlu1 %315 }
 0x4a4   :  { %2429 = vrcp.f32 %v316_v24  ;;  %v2402_v24 = vld [vmem:[%s3019_s6 + $0x8] sm:$0xff]  }
 0x4a5   :  { %v324_v25 = vpop.permute.xlu0 %323 }
 0x4a6   :  { %v330_v26 = vsel %vm328_vm4, %v324_v25, 0 }
 0x4a7   :  { %2222 = vmatpush3.bf16.msra.mxu1 %v330_v26  ;;  %v473_v34 = vpop.permute.xlu1 %472 }
 0x4a8   :  { %2233 = vmatprep.subr.bf16.mxu1 %v2509_v16  ;;  %v478_v37 = vsel %vm187_vm2, %v473_v34, 0 }
 0x4a9   :  { %v421_v38 = vpop.permute.xlu0 %420 }
 0x4ab   :  { %v471_v39 = vpop.permute.xlu1 %470 }
 0x4ac   :  { %v2428_v27 = vpop.eup %2427 }
 0x4ad   :  { %v319_v28 = vmul.f32 %v2428_v27, %v2424_v18 }
 0x4ae   :  { %v2430_v29 = vpop.eup %2429 }
 0x4af   :  { %v320_v30 = vmul.f32 %v2430_v29, %v2426_v20  ;;  %v321_v31 = vpack.c.bf16 %v319_v28, %v319_v28 }
 0x4b1   :  { %2224 = vmatmul.mubr.msk.bf16.vlgmr.msra.gmra.mrb[4].mxu1 %vm298_vm3, %v321_v31  ;;  %v322_v36 = vpack.c.bf16 %v320_v30, %v320_v30 }
 0x4b2   :  { %2234 = vmatpush3.bf16.xpose.msra.mxu1 %v428_v35  ;;  %2235 = vmatprep.mubr.msk.bf16.mxu1 %vm2510_vm1, %v2509_v16 }
 0x4b3   :  { %2230 = vmatmul.mubr.msk.bf16.vlgmr.msra.gmra.mrb[8].mxu0 %vm298_vm3, %v322_v36  ;;  %2245 = vmatprep.subr.bf16.mxu1 %v2509_v16 }
 0x4b4   :  { %2240 = vmatpush3.bf16.xpose.msra.mxu0 %v478_v37  ;;  %2241 = vmatprep.mubr.msk.bf16.mxu0 %vm2510_vm1, %v2509_v16 }
 0x4b5   :  { %2251 = vmatprep.subr.bf16.mxu0 %v2509_v16 }
 0x4b9   :  { %2236 = vmatmul.mubr.msk.bf16.vlgmr.msra.gmra.mrb[8].mxu1 %vm187_vm2, %v421_v38 }
 0x4ba   :  { %2247 = vmatprep.mubr.msk.bf16.mxu1 %vm2510_vm1, %v2509_v16 }
 0x4bb   :  { %2242 = vmatmul.mubr.msk.bf16.vlgmr.msra.gmra.mrb[12].mxu0 %vm187_vm2, %v471_v39 }
 0x4bc   :  { %2253 = vmatprep.mubr.msk.bf16.mxu0 %vm2510_vm1, %v2509_v16 }
 0x584   :  { %v2711_v41 = vpop.f32.mrb[4].mxu1 }
 0x585   :  { %v2225_v42 = vpop.f32.mrb[5].mxu1 }
 0x586   :  { %v369_v44 = vpop.f32.mrb[6].mxu1  ;;  %v2713_v45 = vpop.f32.mrb[8].mxu0 }
 0x587   :  { %v2226_v46 = vpop.f32.mrb[7].mxu1  ;;  %v2231_v47 = vpop.f32.mrb[9].mxu0 }
 0x588   :  { %v417_v48 = vpop.f32.mrb[10].mxu0  ;;  %v2049_v46 = vld [vmem:[%s3020_s7] ss:$0 sm:$0xff] }
 0x589   :  { %v2232_v49 = vpop.f32.mrb[11].mxu0 }
 0x58c   :  { %v464_v50 = vpop.f32.mrb[8].mxu1 }
 0x58d   :  { %v520_v51 = vmul.f32 0.25, %v464_v50  ;;  %v2237_v52 = vpop.f32.mrb[9].mxu1 }
 0x58e   :  { %v467_v53 = vpop.f32.mrb[10].mxu1  ;;  %v514_v54 = vpop.f32.mrb[12].mxu0 }
 0x58f   :  { %v521_v55 = vmul.f32 0.25, %v514_v54  ;;  %v2238_v56 = vpop.f32.mrb[11].mxu1  ;;  %v2243_v58 = vpop.f32.mrb[13].mxu0  ;;  %v522_v59 = vadd.f32 %v520_v51, %v2669_v57 }
 0x590   :  { %v517_v60 = vpop.f32.mrb[14].mxu0 }
 0x591   :  { %v2244_v62 = vpop.f32.mrb[15].mxu0  ;;  %v524_v63 = vsel %vm298_vm3, %v522_v59, -inf  ;;  %v523_v0 = vadd.f32 %v521_v55, %v2671_v61 }
 0x592   :  { %525 = vmax.xlane.f32.xlu0 %v524_v63 }
 0x593   :  { %v527_v1 = vsel %vm298_vm3, %v523_v0, -inf }
 0x594   :  { %528 = vmax.xlane.f32.xlu1 %v527_v1 }
 0x5a5   :  { %596 = vrot.lane.b32.xlu1 %v2645_v43, %s2515_s25 }
 0x61f   :  { %v526_v2 = vpop.xlane.xlu0 %525 }
 0x620   :  { %v530_v3 = vsub.f32 %v522_v59, %v526_v2  ;;  %v2404_v2 = vld [vmem:[%s3023_s10 + $0x8] sm:$0xff]  }
 0x621   :  { %v529_v4 = vpop.xlane.xlu1 %528 }
 0x622   :  { %v532_v5 = vmul.f32 1.442695, %v530_v3  ;;  %v531_v6 = vsub.f32 %v523_v0, %v529_v4 }
 0x624   :  { %2431 = vpow2.f32 %v532_v5  ;;  %v534_v7 = vmul.f32 1.442695, %v531_v6 }
 0x625   :  { %v597_v8 = vpop.permute.xlu1 %596 }
 0x626   :  { %2433 = vpow2.f32 %v534_v7  ;;  %v602_v9 = vsel %vm328_vm4, %v597_v8, 0 }
 0x627   :  { %2252 = vmatpush3.bf16.msra.mxu0 %v602_v9 }
 0x628   :  { %2265 = vmatprep.subr.bf16.mxu0 %v2509_v16 }
 0x62e   :  { %v2432_v10 = vpop.eup %2431 }
 0x62f   :  { %v536_v11 = vsel %vm298_vm3, %v2432_v10, 0.0 }
 0x630   :  { %v2434_v12 = vpop.eup %2433  ;;  %537 = vadd.xlane.f32.xlu0 %v536_v11  ;;  %v2053_v11 = vld [vmem:[%s3021_s8] ss:$0 sm:$0xff] }
 0x631   :  { %v539_v43 = vsel %vm298_vm3, %v2434_v12, 0.0 }
 0x634   :  { %540 = vadd.xlane.f32.xlu0 %v539_v43 }
 0x64a   :  { %548 = vrot.lane.b32.xlu0 %v2643_v40, %s2515_s25 }
 0x6bd   :  { %v538_v13 = vpop.xlane.xlu0 %537 }
 0x6be   :  { %2435 = vrcp.f32 %v538_v13 }
 0x6c1   :  { %v541_v14 = vpop.xlane.xlu0 %540 }
 0x6c2   :  { %2437 = vrcp.f32 %v541_v14  ;;  %v2054_v14 = vld [vmem:[%s3022_s9] ss:$0 sm:$0xff] }
 0x6c5   :  { %v549_v15 = vpop.permute.xlu0 %548 }
 0x6c6   :  { %v554_v17 = vsel %vm328_vm4, %v549_v15, 0 }
 0x6c7   :  { %2246 = vmatpush3.bf16.msra.mxu1 %v554_v17 }
 0x6c8   :  { %v2436_v18 = vpop.eup %2435  ;;  %2257 = vmatprep.subr.bf16.mxu1 %v2509_v16 }
 0x6c9   :  { %v544_v19 = vmul.f32 %v2436_v18, %v2432_v10 }
 0x6cb   :  { %v546_v20 = vpack.c.bf16 %v544_v19, %v544_v19 }
 0x6cc   :  { %v2438_v21 = vpop.eup %2437 }
 0x6cd   :  { %v545_v22 = vmul.f32 %v2438_v21, %v2434_v12  ;;  %2248 = vmatmul.mubr.msk.bf16.vlgmr.msra.gmra.mrb[12].mxu1 %vm298_vm3, %v546_v20  ;;  %v2405_v20 = vld [vmem:[%s3025_s12] sm:$0xff]   ;;  %v2406_v21 = vld [vmem:[%s3025_s12 + $0x8] sm:$0xff]  }
 0x6ce   :  { %2261 = vmatprep.mubr.msk.bf16.mxu1 %vm2510_vm1, %v2509_v16  ;;  %2258 = vmatpush3.bf16.msra.mxu1 %v2401_v23  ;;  %v2055_v23 = vld [vmem:[%s3024_s11] ss:$0 sm:$0xff] }
 0x6cf   :  { %v547_v40 = vpack.c.bf16 %v545_v22, %v545_v22  ;;  %2259 = vmatprep.subr.bf16.mxu1 %v2509_v16  ;;  %v2407_v22 = vld [vmem:[%s3025_s12 + $0x10] sm:$0xff]  }
 0x6d1   :  { %2254 = vmatmul.mubr.msk.bf16.vlgmr.msra.gmra.mrb[16].mxu0 %vm298_vm3, %v547_v40  ;;  %v2408_v40 = vld [vmem:[%s3025_s12 + $0x18] sm:$0xff]  }
 0x6d2   :  { %2269 = vmatprep.mubr.msk.bf16.mxu0 %vm2510_vm1, %v2509_v16  ;;  %2260 = vmatpush3.bf16.msra.mxu1 %v2402_v24 }
 0x6d3   :  { %2273 = vmatprep.subr.bf16.mxu1 %v2509_v16 }
 0x7a0   :  { %v590_v25 = vpop.f32.mrb[12].mxu1 }
 0x7a1   :  { %v2249_v26 = vpop.f32.mrb[13].mxu1 }
 0x7a2   :  { %v593_v27 = vpop.f32.mrb[14].mxu1 }
 0x7a3   :  { %v2250_v28 = vpop.f32.mrb[15].mxu1 }
 0x7a4   :  { %v638_v29 = vpop.f32.mrb[16].mxu0 }
 0x7a5   :  { %v2389_v30 = vpack.i.bf16 %v638_v29, %v590_v25  ;;  %v2255_v31 = vpop.f32.mrb[17].mxu0 }
 0x7a6   :  { %v641_v34 = vpop.f32.mrb[18].mxu0 }
 0x7a7   :  { %2390 = vrot.lane.b32.xlu1 %v2389_v30, %s2516_s30  ;;  %v2256_v35 = vpop.f32.mrb[19].mxu0 }
 0x819   :  { %v2391_v36 = vpop.permute.xlu1 %2390 }
 0x81a   :  { %v2393_v37 = vunpack.i.h.bf16 %v2391_v36  ;;  %v2392_v38 = vunpack.i.l.bf16 %v2391_v36 }
 0x81c   :  { %v653_v39 = vsel %vm187_vm2, %v2713_v45, %v2393_v37  ;;  %v652_v42 = vsel %vm187_vm2, %v2711_v41, %v2392_v38 }
 0x81d   :  { %v654_v44 = vpack.c.bf16 %v653_v39, %v652_v42 }
 0x81f   :  { %2262 = vmatmul.mubr.msk.bf16.vlgmr.msra.gmra.mrb[16].mxu1 %vm67_vm0, %v654_v44 }
 0x820   :  { %2281 = vmatprep.mubr.msk.bf16.mxu1 %vm2510_vm1, %v2509_v16  ;;  %2274 = vmatpush3.bf16.msra.mxu1 %v2405_v20 }
 0x821   :  { %2275 = vmatprep.subr.bf16.mxu1 %v2509_v16 }
 0x824   :  { %2276 = vmatpush3.bf16.msra.mxu1 %v2406_v21 }
 0x825   :  { %2277 = vmatprep.subr.bf16.mxu1 %v2509_v16 }
 0x828   :  { %2278 = vmatpush3.bf16.msra.mxu1 %v2407_v22 }
 0x829   :  { %2279 = vmatprep.subr.bf16.mxu1 %v2509_v16 }
 0x82c   :  { %2280 = vmatpush3.bf16.msra.mxu1 %v2408_v40 }
 0x82d   :  { %2299 = vmatprep.subr.bf16.mxu1 %v2509_v16 }
 0x8f2   :  { %v715_v47 = vpop.f32.mrb[16].mxu1 }
 0x8f3   :  { %v716_v48 = vadd.f32 %v2049_v46, %v715_v47  ;;  %v2263_v49 = vpop.f32.mrb[17].mxu1 }
 0x8f4   :  { %v718_v50 = vpop.f32.mrb[18].mxu1 }
 0x8f5   :  { %v719_v51 = vadd.f32 %v2049_v46, %v718_v50  ;;  %v2264_v52 = vpop.f32.mrb[19].mxu1  ;;  %v722_v45 = vadd.f32 %v716_v48, %v2631_v32 }
 0x8f7   :  { %v726_v41 = vsel %vm67_vm0, %v722_v45, 0.0  ;;  %v723_v53 = vadd.f32 %v719_v51, %v2633_v33  ;;  %v2403_v33 = vld [vmem:[%s3023_s10] sm:$0xff]  }
 0x8f8   :  { %727 = vadd.xlane.f32.xlu1 %v726_v41  ;;  %2266 = vmatpush3.bf16.msra.mxu0 %v2403_v33 }
 0x8f9   :  { %v729_v54 = vsel %vm67_vm0, %v723_v53, 0.0  ;;  %2267 = vmatprep.subr.bf16.mxu0 %v2509_v16 }
 0x8fa   :  { %730 = vadd.xlane.f32.xlu0 %v729_v54 }
 0x8fc   :  { %2268 = vmatpush3.bf16.msra.mxu0 %v2404_v2 }
 0x8fd   :  { %2285 = vmatprep.subr.bf16.mxu0 %v2509_v16 }
 0x985   :  { %v728_v55 = vpop.xlane.xlu1 %727 }
 0x986   :  { %v732_v56 = vmul.f32 0.03125, %v728_v55 }
 0x987   :  { %v731_v58 = vpop.xlane.xlu0 %730 }
 0x988   :  { %v734_v59 = vsub.f32 %v722_v45, %v732_v56  ;;  %v733_v60 = vmul.f32 0.03125, %v731_v58 }
 0x98a   :  { %v735_v62 = vsub.f32 %v723_v53, %v733_v60  ;;  %v736_v63 = vmul.f32 %v734_v59, %v734_v59  ;;  %v2059_v53 = vld [vmem:[%s3026_s13] ss:$0 sm:$0xff] }
 0x98c   :  { %v738_v0 = vsel %vm67_vm0, %v736_v63, 0.0  ;;  %v737_v1 = vmul.f32 %v735_v62, %v735_v62 }
 0x98d   :  { %739 = vadd.xlane.f32.xlu0 %v738_v0 }
 0x98e   :  { %v741_v32 = vsel %vm67_vm0, %v737_v1, 0.0 }
 0x991   :  { %742 = vadd.xlane.f32.xlu0 %v741_v32 }
 0xa1a   :  { %v740_v3 = vpop.xlane.xlu0 %739 }
 0xa1b   :  { %v744_v4 = vmul.f32 0.03125, %v740_v3 }
 0xa1d   :  { %v746_v5 = vadd.f32 1e-12, %v744_v4 }
 0xa1e   :  { %v743_v6 = vpop.xlane.xlu0 %742 }
 0xa1f   :  { %2439 = vrsqrt.f32 %v746_v5  ;;  %v745_v7 = vmul.f32 0.03125, %v743_v6 }
 0xa21   :  { %v747_v8 = vadd.f32 1e-12, %v745_v7 }
 0xa23   :  { %2441 = vrsqrt.f32 %v747_v8 }
 0xa29   :  { %v2440_v9 = vpop.eup %2439 }
 0xa2a   :  { %v750_v10 = vmul.f32 %v2440_v9, %v734_v59 }
 0xa2c   :  { %v758_v43 = vmul.f32 %v2053_v11, %v750_v10  ;;  %v2409_v10 = vld [vmem:[%s3017_s4 + $0x10] sm:$0xff]  }
 0xa2d   :  { %v2442_v12 = vpop.eup %2441 }
 0xa2e   :  { %v751_v13 = vmul.f32 %v2442_v12, %v735_v62  ;;  %v766_v17 = vadd.f32 %v2054_v14, %v758_v43 }
 0xa30   :  { %v759_v15 = vmul.f32 %v2053_v11, %v751_v13  ;;  %v2410_v11 = vld [vmem:[%s3017_s4 + $0x18] sm:$0xff]  }
 0xa32   :  { %v767_v18 = vadd.f32 %v2054_v14, %v759_v15 }
 0xa34   :  { %v768_v19 = vpack.c.bf16 %v767_v18, %v766_v17 }
 0xa36   :  { %2270 = vmatmul.mubr.msk.bf16.vlgmr.msra.gmra.mrb[20].mxu0 %vm67_vm0, %v768_v19  ;;  %v2065_v19 = vld [vmem:[%s3027_s14] ss:$0 sm:$0xff] }
 0xa37   :  { %2289 = vmatprep.mubr.msk.bf16.mxu0 %vm2510_vm1, %v2509_v16  ;;  %2286 = vmatpush3.bf16.msra.mxu0 %v2409_v10 }
 0xa38   :  { %2287 = vmatprep.subr.bf16.mxu0 %v2509_v16 }
 0xa3b   :  { %2288 = vmatpush3.bf16.msra.mxu0 %v2410_v11 }
 0xa3c   :  { %2293 = vmatprep.subr.bf16.mxu0 %v2509_v16 }
 0xb09   :  { %v829_v24 = vpop.f32.mrb[20].mxu0 }
 0xb0a   :  { %v830_v25 = vadd.f32 %v2055_v23, %v829_v24  ;;  %v2271_v26 = vpop.f32.mrb[21].mxu0 }
 0xb0b   :  { %v832_v27 = vpop.f32.mrb[22].mxu0 }
 0xb0c   :  { %v838_v28 = vmul.f32 0.044715, %v830_v25  ;;  %v833_v29 = vadd.f32 %v2055_v23, %v832_v27  ;;  %v2272_v30 = vpop.f32.mrb[23].mxu0  ;;  %v836_v49 = vmul.f32 0.5, %v830_v25  ;;  %v2066_v23 = vld [vmem:[%s3028_s15] ss:$0 sm:$0xff] }
 0xb0e   :  { %v840_v31 = vmul.f32 %v838_v28, %v830_v25  ;;  %v839_v34 = vmul.f32 0.044715, %v833_v29  ;;  %v837_v50 = vmul.f32 0.5, %v833_v29  ;;  %v2072_v28 = vld [vmem:[%s3018_s5 + $0x1] ss:$0 sm:$0xff] }
 0xb10   :  { %v842_v35 = vmul.f32 %v840_v31, %v830_v25  ;;  %v841_v36 = vmul.f32 %v839_v34, %v833_v29 }
 0xb12   :  { %v844_v37 = vadd.f32 %v842_v35, %v830_v25  ;;  %v843_v38 = vmul.f32 %v841_v36, %v833_v29 }
 0xb14   :  { %v846_v39 = vmul.f32 0.7978846, %v844_v37  ;;  %v845_v42 = vadd.f32 %v843_v38, %v833_v29 }
 0xb16   :  { %2443 = vtanh.f32 %v846_v39  ;;  %v847_v44 = vmul.f32 0.7978846, %v845_v42 }
 0xb18   :  { %2445 = vtanh.f32 %v847_v44 }
 0xb20   :  { %v2444_v46 = vpop.eup %2443 }
 0xb21   :  { %v850_v47 = vadd.f32 1.0, %v2444_v46 }
 0xb22   :  { %v2446_v48 = vpop.eup %2445 }
 0xb23   :  { %v851_v51 = vadd.f32 1.0, %v2446_v48  ;;  %v852_v52 = vmul.f32 %v850_v47, %v836_v49 }
 0xb25   :  { %v853_v45 = vmul.f32 %v851_v51, %v837_v50 }
 0xb27   :  { %v854_v41 = vpack.c.bf16 %v853_v45, %v852_v52 }
 0xb29   :  { %2282 = vmatmul.mubr.msk.bf16.vlgmr.msra.gmra.mrb[20].mxu1 %vm894_vm5, %v854_v41 }
 0xb2a   :  { %2301 = vmatprep.mubr.msk.bf16.mxu1 %vm2510_vm1, %v2509_v16 }
 0xbfc   :  { %v932_v54 = vpop.f32.mrb[20].mxu1 }
 0xbfd   :  { %v933_v55 = vadd.f32 %v2059_v53, %v932_v54  ;;  %v2283_v56 = vpop.f32.mrb[21].mxu1 }
 0xbfe   :  { %v935_v58 = vpop.f32.mrb[22].mxu1 }
 0xbff   :  { %v936_v59 = vadd.f32 %v2059_v53, %v935_v58  ;;  %v2284_v60 = vpop.f32.mrb[23].mxu1  ;;  %v939_v62 = vadd.f32 %v933_v55, %v766_v17 }
 0xc01   :  { %v943_v63 = vsel %vm67_vm0, %v939_v62, 0.0  ;;  %v940_v0 = vadd.f32 %v936_v59, %v767_v18 }
 0xc02   :  { %944 = vadd.xlane.f32.xlu1 %v943_v63 }
 0xc03   :  { %v946_v1 = vsel %vm67_vm0, %v940_v0, 0.0 }
 0xc04   :  { %947 = vadd.xlane.f32.xlu0 %v946_v1 }
 0xc8f   :  { %v945_v32 = vpop.xlane.xlu1 %944 }
 0xc90   :  { %v949_v33 = vmul.f32 0.03125, %v945_v32 }
 0xc91   :  { %v948_v2 = vpop.xlane.xlu0 %947 }
 0xc92   :  { %v951_v3 = vsub.f32 %v939_v62, %v949_v33  ;;  %v950_v4 = vmul.f32 0.03125, %v948_v2 }
 0xc94   :  { %v952_v5 = vsub.f32 %v940_v0, %v950_v4  ;;  %v953_v6 = vmul.f32 %v951_v3, %v951_v3 }
 0xc96   :  { %v955_v7 = vsel %vm67_vm0, %v953_v6, 0.0  ;;  %v954_v8 = vmul.f32 %v952_v5, %v952_v5 }
 0xc97   :  { %956 = vadd.xlane.f32.xlu1 %v955_v7 }
 0xc98   :  { %v958_v9 = vsel %vm67_vm0, %v954_v8, 0.0 }
 0xc99   :  { %959 = vadd.xlane.f32.xlu0 %v958_v9 }
 0xd24   :  { %v957_v12 = vpop.xlane.xlu1 %956 }
 0xd25   :  { %v961_v43 = vmul.f32 0.03125, %v957_v12 }
 0xd26   :  { %v960_v13 = vpop.xlane.xlu0 %959 }
 0xd27   :  { %v963_v14 = vadd.f32 1e-12, %v961_v43  ;;  %v962_v15 = vmul.f32 0.03125, %v960_v13 }
 0xd29   :  { %2447 = vrsqrt.f32 %v963_v14  ;;  %v964_v17 = vadd.f32 1e-12, %v962_v15 }
 0xd2b   :  { %2449 = vrsqrt.f32 %v964_v17 }
 0xd33   :  { %v2448_v18 = vpop.eup %2447 }
 0xd34   :  { %v967_v20 = vmul.f32 %v2448_v18, %v951_v3 }
 0xd35   :  { %v2450_v21 = vpop.eup %2449 }
 0xd36   :  { %v975_v22 = vmul.f32 %v2065_v19, %v967_v20  ;;  %v968_v40 = vmul.f32 %v2450_v21, %v952_v5 }
 0xd38   :  { %v976_v24 = vmul.f32 %v2065_v19, %v968_v40  ;;  %v2820_v25 = vadd.f32 %v2066_v23, %v975_v22 }
 0xd3a   :  { %v2822_v26 = vadd.f32 %v2066_v23, %v976_v24 }
 0xd3c   :  { %v985_v27 = vpack.c.bf16 %v2822_v26, %v2820_v25 }
 0xd3e   :  { %2290 = vmatmul.mubr.msk.bf16.vlgmr.msra.gmra.mrb[24].mxu0 %vm67_vm0, %v985_v27 }
 0xd3f   :  { %2295 = vmatprep.mubr.msk.bf16.mxu0 %vm2510_vm1, %v2509_v16 }
 0xe11   :  { %v1048_v29 = vpop.f32.mrb[24].mxu0 }
 0xe12   :  { %v1049_v30 = vadd.f32 %v2072_v28, %v1048_v29  ;;  %v2291_v31 = vpop.f32.mrb[25].mxu0 }
 0xe13   :  { %v1051_v34 = vpop.f32.mrb[26].mxu0 }
 0xe14   :  { %v2832_v35 = vpack.c.bf16 %v1049_v30, %v1049_v30  ;;  %v1052_v36 = vadd.f32 %v2072_v28, %v1051_v34  ;;  %v2292_v37 = vpop.f32.mrb[27].mxu0 }
 0xe16   :  { %v2834_v38 = vpack.c.bf16 %v1052_v36, %v1052_v36  ;;  %1061 = vrot.lane.b32.xlu1 %v2832_v35, %s2511_s3 }
 0xe18   :  { %1109 = vrot.lane.b32.xlu0 %v2834_v38, %s2511_s3 }
 0xe88   :  { %v1062_v39 = vpop.permute.xlu1 %1061 }
 0xe89   :  { %v1067_v42 = vsel %vm187_vm2, %v1062_v39, 0 }
 0xe8a   :  { %2294 = vmatpush3.bf16.xpose.msra.mxu0 %v1067_v42  ;;  %v1110_v44 = vpop.permute.xlu0 %1109 }
 0xe8b   :  { %v1115_v46 = vsel %vm187_vm2, %v1110_v44, 0  ;;  %2305 = vmatprep.subr.bf16.mxu0 %v2509_v16 }
 0xe8c   :  { %2300 = vmatpush3.bf16.xpose.msra.mxu1 %v1115_v46 }
 0xe8d   :  { %2311 = vmatprep.subr.bf16.mxu1 %v2509_v16 }
 0xe91   :  { %2296 = vmatmul.mubr.msk.bf16.vlgmr.msra.gmra.mrb[28].mxu0 %vm187_vm2, %v2832_v35 }
 0xe92   :  { %2307 = vmatprep.mubr.msk.bf16.mxu0 %vm2510_vm1, %v2509_v16 }
 0xe93   :  { %2302 = vmatmul.mubr.msk.bf16.vlgmr.msra.gmra.mrb[24].mxu1 %vm187_vm2, %v2834_v38 }
 0xe94   :  { %2313 = vmatprep.mubr.msk.bf16.mxu1 %vm2510_vm1, %v2509_v16 }
 0xf64   :  { %v1103_v47 = vpop.f32.mrb[28].mxu0 }
 0xf65   :  { %v1157_v48 = vmul.f32 0.25, %v1103_v47  ;;  %v2297_v49 = vpop.f32.mrb[29].mxu0 }
 0xf66   :  { %v1106_v50 = vpop.f32.mrb[30].mxu0  ;;  %v1151_v51 = vpop.f32.mrb[24].mxu1 }
 0xf67   :  { %v1158_v52 = vmul.f32 0.25, %v1151_v51  ;;  %v2298_v45 = vpop.f32.mrb[31].mxu0  ;;  %v2303_v41 = vpop.f32.mrb[25].mxu1  ;;  %v1159_v53 = vadd.f32 %v1157_v48, %v2669_v57 }
 0xf68   :  { %v1154_v54 = vpop.f32.mrb[26].mxu1 }
 0xf69   :  { %v2304_v55 = vpop.f32.mrb[27].mxu1  ;;  %v1161_v56 = vsel %vm298_vm3, %v1159_v53, -inf  ;;  %v1160_v58 = vadd.f32 %v1158_v52, %v2671_v61 }
 0xf6a   :  { %1162 = vmax.xlane.f32.xlu1 %v1161_v56 }
 0xf6b   :  { %v1164_v59 = vsel %vm298_vm3, %v1160_v58, -inf }
 0xf6c   :  { %1165 = vmax.xlane.f32.xlu0 %v1164_v59 }
 0xf7b   :  { %1185 = vrot.lane.b32.xlu1 %v2832_v35, %s2512_s22 }
 0xff7   :  { %v1163_v60 = vpop.xlane.xlu1 %1162 }
 0xff8   :  { %v1167_v62 = vsub.f32 %v1159_v53, %v1163_v60 }
 0xff9   :  { %v1166_v63 = vpop.xlane.xlu0 %1165 }
 0xffa   :  { %v1169_v0 = vmul.f32 1.442695, %v1167_v62  ;;  %v1168_v1 = vsub.f32 %v1160_v58, %v1166_v63 }
 0xffb   :  { %v1186_v32 = vpop.permute.xlu1 %1185 }
 0xffc   :  { %2451 = vpow2.f32 %v1169_v0  ;;  %v1171_v33 = vmul.f32 1.442695, %v1168_v1  ;;  %v1191_v2 = vsel %vm328_vm4, %v1186_v32, 0 }
 0xffd   :  { %2306 = vmatpush3.bf16.msra.mxu0 %v1191_v2 }
 0xffe   :  { %2453 = vpow2.f32 %v1171_v33  ;;  %2317 = vmatprep.subr.bf16.mxu0 %v2509_v16 }
0x1006   :  { %v2452_v3 = vpop.eup %2451 }
0x1007   :  { %v1173_v4 = vsel %vm298_vm3, %v2452_v3, 0.0 }
0x1008   :  { %v2454_v5 = vpop.eup %2453  ;;  %1174 = vadd.xlane.f32.xlu1 %v1173_v4 }
0x1009   :  { %v1176_v6 = vsel %vm298_vm3, %v2454_v5, 0.0 }
0x100a   :  { %1177 = vadd.xlane.f32.xlu0 %v1176_v6  ;;  %v2411_v6 = vld [vmem:[%s3019_s6 + $0x10] sm:$0xff]  }
0x1019   :  { %1283 = vrot.lane.b32.xlu1 %v2832_v35, %s2513_s23 }
0x101d   :  { %1333 = vrot.lane.b32.xlu1 %v2834_v38, %s2513_s23 }
0x1020   :  { %1233 = vrot.lane.b32.xlu0 %v2834_v38, %s2512_s22 }
0x1021   :  { %1281 = vrot.lane.b32.xlu1 %v2832_v35, %s2514_s24 }
0x1024   :  { %1331 = vrot.lane.b32.xlu0 %v2834_v38, %s2514_s24 }
0x1095   :  { %v1175_v7 = vpop.xlane.xlu1 %1174 }
0x1096   :  { %2455 = vrcp.f32 %v1175_v7  ;;  %v2412_v7 = vld [vmem:[%s3019_s6 + $0x18] sm:$0xff]  }
0x1097   :  { %v1178_v8 = vpop.xlane.xlu0 %1177 }
0x1098   :  { %2457 = vrcp.f32 %v1178_v8 }
0x1099   :  { %v1284_v11 = vpop.permute.xlu1 %1283 }
0x109a   :  { %v1289_v18 = vsel %vm187_vm2, %v1284_v11, 0 }
0x109b   :  { %v1234_v9 = vpop.permute.xlu0 %1233 }
0x109c   :  { %v1239_v10 = vsel %vm328_vm4, %v1234_v9, 0 }
0x109d   :  { %2312 = vmatpush3.bf16.msra.mxu1 %v1239_v10  ;;  %v1334_v17 = vpop.permute.xlu1 %1333 }
0x109e   :  { %2323 = vmatprep.subr.bf16.mxu1 %v2509_v16  ;;  %v1339_v20 = vsel %vm187_vm2, %v1334_v17, 0 }
0x109f   :  { %v1332_v22 = vpop.permute.xlu0 %1331 }
0x10a0   :  { %v2456_v12 = vpop.eup %2455 }
0x10a1   :  { %v1181_v43 = vmul.f32 %v2456_v12, %v2452_v3  ;;  %v1282_v21 = vpop.permute.xlu1 %1281 }
0x10a2   :  { %v2458_v13 = vpop.eup %2457 }
0x10a3   :  { %v1182_v14 = vmul.f32 %v2458_v13, %v2454_v5  ;;  %v1183_v15 = vpack.c.bf16 %v1181_v43, %v1181_v43 }
0x10a5   :  { %2308 = vmatmul.mubr.msk.bf16.vlgmr.msra.gmra.mrb[32].mxu0 %vm298_vm3, %v1183_v15  ;;  %v1184_v19 = vpack.c.bf16 %v1182_v14, %v1182_v14 }
0x10a6   :  { %2318 = vmatpush3.bf16.xpose.msra.mxu0 %v1289_v18  ;;  %2319 = vmatprep.mubr.msk.bf16.mxu0 %vm2510_vm1, %v2509_v16 }
0x10a7   :  { %2314 = vmatmul.mubr.msk.bf16.vlgmr.msra.gmra.mrb[28].mxu1 %vm298_vm3, %v1184_v19  ;;  %2329 = vmatprep.subr.bf16.mxu0 %v2509_v16 }
0x10a8   :  { %2324 = vmatpush3.bf16.xpose.msra.mxu1 %v1339_v20  ;;  %2325 = vmatprep.mubr.msk.bf16.mxu1 %vm2510_vm1, %v2509_v16 }
0x10a9   :  { %2335 = vmatprep.subr.bf16.mxu1 %v2509_v16 }
0x10ad   :  { %2320 = vmatmul.mubr.msk.bf16.vlgmr.msra.gmra.mrb[36].mxu0 %vm187_vm2, %v1282_v21 }
0x10ae   :  { %2331 = vmatprep.mubr.msk.bf16.mxu0 %vm2510_vm1, %v2509_v16 }
0x10af   :  { %2326 = vmatmul.mubr.msk.bf16.vlgmr.msra.gmra.mrb[32].mxu1 %vm187_vm2, %v1332_v22 }
0x10b0   :  { %2337 = vmatprep.mubr.msk.bf16.mxu1 %vm2510_vm1, %v2509_v16 }
0x1178   :  { %v2890_v40 = vpop.f32.mrb[32].mxu0 }
0x1179   :  { %v2309_v23 = vpop.f32.mrb[33].mxu0 }
0x117a   :  { %v1230_v24 = vpop.f32.mrb[34].mxu0  ;;  %v2892_v27 = vpop.f32.mrb[28].mxu1  ;;  %v2091_v23 = vld [vmem:[%s3020_s7 + $0x1] ss:$0 sm:$0xff] }
0x117b   :  { %v2310_v28 = vpop.f32.mrb[35].mxu0  ;;  %v2315_v29 = vpop.f32.mrb[29].mxu1 }
0x117c   :  { %v1278_v30 = vpop.f32.mrb[30].mxu1 }
0x117d   :  { %v2316_v31 = vpop.f32.mrb[31].mxu1 }
0x1180   :  { %v1325_v34 = vpop.f32.mrb[36].mxu0 }
0x1181   :  { %v1381_v36 = vmul.f32 0.25, %v1325_v34  ;;  %v2321_v37 = vpop.f32.mrb[37].mxu0 }
0x1182   :  { %v1328_v39 = vpop.f32.mrb[38].mxu0  ;;  %v1375_v42 = vpop.f32.mrb[32].mxu1 }
0x1183   :  { %v1382_v44 = vmul.f32 0.25, %v1375_v42  ;;  %v2322_v46 = vpop.f32.mrb[39].mxu0  ;;  %v2327_v47 = vpop.f32.mrb[33].mxu1  ;;  %v1383_v48 = vadd.f32 %v1381_v36, %v2669_v57 }
0x1184   :  { %v1378_v49 = vpop.f32.mrb[34].mxu1 }
0x1185   :  { %v2328_v50 = vpop.f32.mrb[35].mxu1  ;;  %v1385_v51 = vsel %vm298_vm3, %v1383_v48, -inf  ;;  %v1384_v52 = vadd.f32 %v1382_v44, %v2671_v61 }
0x1186   :  { %1386 = vmax.xlane.f32.xlu1 %v1385_v51 }
0x1187   :  { %v1388_v45 = vsel %vm298_vm3, %v1384_v52, -inf }
0x1188   :  { %1389 = vmax.xlane.f32.xlu0 %v1388_v45 }
0x1197   :  { %1409 = vrot.lane.b32.xlu1 %v2832_v35, %s2515_s25 }
0x1213   :  { %v1387_v41 = vpop.xlane.xlu1 %1386 }
0x1214   :  { %v1391_v53 = vsub.f32 %v1383_v48, %v1387_v41 }
0x1215   :  { %v1390_v54 = vpop.xlane.xlu0 %1389 }
0x1216   :  { %v1393_v55 = vmul.f32 1.442695, %v1391_v53  ;;  %v1392_v56 = vsub.f32 %v1384_v52, %v1390_v54  ;;  %v2414_v52 = vld [vmem:[%s3023_s10 + $0x18] sm:$0xff]  }
0x1217   :  { %v1410_v58 = vpop.permute.xlu1 %1409 }
0x1218   :  { %2459 = vpow2.f32 %v1393_v55  ;;  %v1395_v57 = vmul.f32 1.442695, %v1392_v56  ;;  %v1415_v59 = vsel %vm328_vm4, %v1410_v58, 0 }
0x1219   :  { %2330 = vmatpush3.bf16.msra.mxu0 %v1415_v59 }
0x121a   :  { %2461 = vpow2.f32 %v1395_v57  ;;  %2341 = vmatprep.subr.bf16.mxu0 %v2509_v16  ;;  %v2097_v57 = vld [vmem:[%s3021_s8 + $0x1] ss:$0 sm:$0xff] }
0x1222   :  { %v2460_v61 = vpop.eup %2459 }
0x1223   :  { %v1397_v60 = vsel %vm298_vm3, %v2460_v61, 0.0 }
0x1224   :  { %v2462_v62 = vpop.eup %2461  ;;  %1398 = vadd.xlane.f32.xlu0 %v1397_v60 }
0x1225   :  { %v1400_v35 = vsel %vm298_vm3, %v2462_v62, 0.0 }
0x1228   :  { %1401 = vadd.xlane.f32.xlu0 %v1400_v35  ;;  %v2098_v35 = vld [vmem:[%s3022_s9 + $0x1] ss:$0 sm:$0xff] }
0x123e   :  { %1457 = vrot.lane.b32.xlu0 %v2834_v38, %s2515_s25 }
0x12b1   :  { %v1399_v63 = vpop.xlane.xlu0 %1398 }
0x12b2   :  { %2463 = vrcp.f32 %v1399_v63 }
0x12b5   :  { %v1402_v0 = vpop.xlane.xlu0 %1401 }
0x12b6   :  { %2465 = vrcp.f32 %v1402_v0 }
0x12b9   :  { %v1458_v1 = vpop.permute.xlu0 %1457 }
0x12ba   :  { %v1463_v32 = vsel %vm328_vm4, %v1458_v1, 0 }
0x12bb   :  { %2336 = vmatpush3.bf16.msra.mxu1 %v1463_v32 }
0x12bc   :  { %v2464_v33 = vpop.eup %2463  ;;  %2349 = vmatprep.subr.bf16.mxu1 %v2509_v16 }
0x12bd   :  { %v1405_v2 = vmul.f32 %v2464_v33, %v2460_v61  ;;  %v2415_v33 = vld [vmem:[%s3025_s12 + $0x20] sm:$0xff]  }
0x12bf   :  { %v1407_v3 = vpack.c.bf16 %v1405_v2, %v1405_v2  ;;  %v2416_v2 = vld [vmem:[%s3025_s12 + $0x28] sm:$0xff]  }
0x12c0   :  { %v2466_v4 = vpop.eup %2465 }
0x12c1   :  { %v1406_v5 = vmul.f32 %v2466_v4, %v2462_v62  ;;  %2332 = vmatmul.mubr.msk.bf16.vlgmr.msra.gmra.mrb[40].mxu0 %vm298_vm3, %v1407_v3  ;;  %v2417_v3 = vld [vmem:[%s3025_s12 + $0x30] sm:$0xff]   ;;  %v2418_v4 = vld [vmem:[%s3025_s12 + $0x38] sm:$0xff]  }
0x12c2   :  { %2345 = vmatprep.mubr.msk.bf16.mxu0 %vm2510_vm1, %v2509_v16  ;;  %2342 = vmatpush3.bf16.msra.mxu0 %v2411_v6 }
0x12c3   :  { %v1408_v38 = vpack.c.bf16 %v1406_v5, %v1406_v5  ;;  %2343 = vmatprep.subr.bf16.mxu0 %v2509_v16  ;;  %v2104_v5 = vld [vmem:[%s3024_s11 + $0x1] ss:$0 sm:$0xff] }
0x12c5   :  { %2338 = vmatmul.mubr.msk.bf16.vlgmr.msra.gmra.mrb[36].mxu1 %vm298_vm3, %v1408_v38 }
0x12c6   :  { %2353 = vmatprep.mubr.msk.bf16.mxu1 %vm2510_vm1, %v2509_v16  ;;  %2344 = vmatpush3.bf16.msra.mxu0 %v2412_v7 }
0x12c7   :  { %2357 = vmatprep.subr.bf16.mxu0 %v2509_v16 }
0x1394   :  { %v1451_v8 = vpop.f32.mrb[40].mxu0 }
0x1395   :  { %v2333_v9 = vpop.f32.mrb[41].mxu0 }
0x1396   :  { %v1454_v10 = vpop.f32.mrb[42].mxu0 }
0x1397   :  { %v2334_v11 = vpop.f32.mrb[43].mxu0 }
0x1398   :  { %v1499_v12 = vpop.f32.mrb[36].mxu1 }
0x1399   :  { %v2394_v43 = vpack.i.bf16 %v1499_v12, %v1451_v8  ;;  %v2339_v13 = vpop.f32.mrb[37].mxu1 }
0x139a   :  { %v1502_v14 = vpop.f32.mrb[38].mxu1 }
0x139b   :  { %v2340_v15 = vpop.f32.mrb[39].mxu1  ;;  %2395 = vrot.lane.b32.xlu1 %v2394_v43, %s2516_s30 }
0x140d   :  { %v2396_v17 = vpop.permute.xlu1 %2395 }
0x140e   :  { %v2398_v18 = vunpack.i.h.bf16 %v2396_v17  ;;  %v2397_v19 = vunpack.i.l.bf16 %v2396_v17 }
0x1410   :  { %v1514_v20 = vsel %vm187_vm2, %v2892_v27, %v2398_v18  ;;  %v1513_v21 = vsel %vm187_vm2, %v2890_v40, %v2397_v19 }
0x1411   :  { %v1515_v22 = vpack.c.bf16 %v1514_v20, %v1513_v21 }
0x1413   :  { %2346 = vmatmul.mubr.msk.bf16.vlgmr.msra.gmra.mrb[44].mxu0 %vm67_vm0, %v1515_v22 }
0x1414   :  { %2365 = vmatprep.mubr.msk.bf16.mxu0 %vm2510_vm1, %v2509_v16  ;;  %2358 = vmatpush3.bf16.msra.mxu0 %v2415_v33 }
0x1415   :  { %2359 = vmatprep.subr.bf16.mxu0 %v2509_v16 }
0x1418   :  { %2360 = vmatpush3.bf16.msra.mxu0 %v2416_v2 }
0x1419   :  { %2361 = vmatprep.subr.bf16.mxu0 %v2509_v16 }
0x141c   :  { %2362 = vmatpush3.bf16.msra.mxu0 %v2417_v3  ;;  %v2126_v3 = vld [vmem:[%s3028_s15 + $0x1] ss:$0 sm:$0xff] }
0x141d   :  { %2363 = vmatprep.subr.bf16.mxu0 %v2509_v16 }
0x1420   :  { %2364 = vmatpush3.bf16.msra.mxu0 %v2418_v4 }
0x14e6   :  { %v1578_v24 = vpop.f32.mrb[44].mxu0 }
0x14e7   :  { %v1579_v28 = vadd.f32 %v2091_v23, %v1578_v24  ;;  %v2347_v29 = vpop.f32.mrb[45].mxu0 }
0x14e8   :  { %v1581_v30 = vpop.f32.mrb[46].mxu0 }
0x14e9   :  { %v1582_v31 = vadd.f32 %v2091_v23, %v1581_v30  ;;  %v2348_v34 = vpop.f32.mrb[47].mxu0  ;;  %v1585_v27 = vadd.f32 %v1579_v28, %v2820_v25 }
0x14eb   :  { %v1591_v40 = vsel %vm67_vm0, %v1585_v27, 0.0  ;;  %v1586_v36 = vadd.f32 %v1582_v31, %v2822_v26  ;;  %v2413_v26 = vld [vmem:[%s3023_s10 + $0x10] sm:$0xff]  }
0x14ec   :  { %1592 = vadd.xlane.f32.xlu1 %v1591_v40  ;;  %2350 = vmatpush3.bf16.msra.mxu1 %v2413_v26 }
0x14ed   :  { %v1594_v37 = vsel %vm67_vm0, %v1586_v36, 0.0  ;;  %2351 = vmatprep.subr.bf16.mxu1 %v2509_v16 }
0x14ee   :  { %1595 = vadd.xlane.f32.xlu0 %v1594_v37 }
0x14f0   :  { %2352 = vmatpush3.bf16.msra.mxu1 %v2414_v52 }
0x14f1   :  { %2369 = vmatprep.subr.mxu1 %v2509_v16 }
0x1579   :  { %v1593_v39 = vpop.xlane.xlu1 %1592 }
0x157a   :  { %v1597_v42 = vmul.f32 0.03125, %v1593_v39 }
0x157b   :  { %v1596_v44 = vpop.xlane.xlu0 %1595 }
0x157c   :  { %v1599_v46 = vsub.f32 %v1585_v27, %v1597_v42  ;;  %v1598_v47 = vmul.f32 0.03125, %v1596_v44  ;;  %v2117_v27 = vld [vmem:[%s3026_s13 + $0x1] ss:$0 sm:$0xff] }
0x157e   :  { %v1600_v48 = vsub.f32 %v1586_v36, %v1598_v47  ;;  %v1601_v49 = vmul.f32 %v1599_v46, %v1599_v46 }
0x1580   :  { %v1603_v50 = vsel %vm67_vm0, %v1601_v49, 0.0  ;;  %v1602_v51 = vmul.f32 %v1600_v48, %v1600_v48 }
0x1581   :  { %1604 = vadd.xlane.f32.xlu0 %v1603_v50 }
0x1582   :  { %v1606_v25 = vsel %vm67_vm0, %v1602_v51, 0.0 }
0x1583   :  { %1607 = vadd.xlane.f32.xlu1 %v1606_v25 }
0x160e   :  { %v1605_v45 = vpop.xlane.xlu0 %1604 }
0x160f   :  { %v1609_v41 = vmul.f32 0.03125, %v1605_v45 }
0x1610   :  { %v1608_v53 = vpop.xlane.xlu1 %1607 }
0x1611   :  { %v1611_v54 = vadd.f32 1e-12, %v1609_v41  ;;  %v1610_v55 = vmul.f32 0.03125, %v1608_v53 }
0x1613   :  { %2467 = vrsqrt.f32 %v1611_v54  ;;  %v1612_v56 = vadd.f32 1e-12, %v1610_v55 }
0x1615   :  { %2469 = vrsqrt.f32 %v1612_v56  ;;  %v2483_v56 = vld [vmem:[%s3014_s1] sm:$0x1] }
0x161d   :  { %v2468_v58 = vpop.eup %2467 }
0x161e   :  { %v1615_v59 = vmul.f32 %v2468_v58, %v1599_v46  ;;  %v2002_v58 = vsel %vm2001_vm6, %v2483_v56, 0.0 }
0x161f   :  { %v2470_v61 = vpop.eup %2469 }
0x1620   :  { %v1623_v60 = vmul.f32 %v2097_v57, %v1615_v59  ;;  %v1616_v62 = vmul.f32 %v2470_v61, %v1600_v48 }
0x1622   :  { %v1624_v63 = vmul.f32 %v2097_v57, %v1616_v62  ;;  %v1631_v0 = vadd.f32 %v2098_v35, %v1623_v60  ;;  %v2484_v57 = vld [vmem:[%s3014_s1 + $0x1] sm:$0x1] }
0x1623   :  { %v2005_v59 = vsel %vm2001_vm6, %v2484_v57, 0.0 }
0x1624   :  { %v1632_v1 = vadd.f32 %v2098_v35, %v1624_v63 }
0x1626   :  { %v1633_v32 = vpack.c.bf16 %v1632_v1, %v1631_v0 }
0x1628   :  { %2354 = vmatmul.mubr.msk.bf16.vlgmr.msra.gmra.mrb[40].mxu1 %vm67_vm0, %v1633_v32  ;;  %v2125_v32 = vld [vmem:[%s3027_s14 + $0x1] ss:$0 sm:$0xff]  ;;  %s2517_s14 = smov [#allocation2]  }
0x1629   :  { %2371 = vmatprep.mubr.msk.f32.mxu1 %vm2510_vm1, %v2509_v16  ;;  %s2022_s15 = sshll.u32 %s2517_s14, 4  ;;  %s2023_s15 = int_to_ptr.vmem [resolvable:$true] %s2022_s15 }
0x162a   :  { %s2485_s25 = scalar_lea.vmem %s2023_s15, 32  ;;  %p2490_p1 = scmp.lt.s32.totalorder %s2023_s15, %s2023_s15 }
0x162b   :  { %p2486_p0 = scmp.ne.s32.totalorder %s2023_s15, %s2485_s25  ;;  %p2491_p2 = scmp.lt.s32.totalorder %s2485_s25, %s2485_s25 }
0x162d   :  { %p2492_p3 = por %p2491_p2, %p2490_p1 }
0x162f   :  { %p2493_p4 = pnand %p2492_p3, %p2486_p0 }
0x16fb   :  { %v1696_v38 = vpop.f32.mrb[40].mxu1 }
0x16fc   :  { %v1697_v6 = vadd.f32 %v2104_v5, %v1696_v38  ;;  %v2355_v7 = vpop.f32.mrb[41].mxu1 }
0x16fd   :  { %v1699_v8 = vpop.f32.mrb[42].mxu1 }
0x16fe   :  { %v1705_v9 = vmul.f32 0.044715, %v1697_v6  ;;  %v1700_v10 = vadd.f32 %v2104_v5, %v1699_v8  ;;  %v2356_v11 = vpop.f32.mrb[43].mxu1  ;;  %v1703_v24 = vmul.f32 0.5, %v1697_v6 }
0x1700   :  { %v1707_v12 = vmul.f32 %v1705_v9, %v1697_v6  ;;  %v1706_v43 = vmul.f32 0.044715, %v1700_v10  ;;  %v1704_v28 = vmul.f32 0.5, %v1700_v10 }
0x1702   :  { %v1709_v13 = vmul.f32 %v1707_v12, %v1697_v6  ;;  %v1708_v14 = vmul.f32 %v1706_v43, %v1700_v10 }
0x1704   :  { %v1711_v15 = vadd.f32 %v1709_v13, %v1697_v6  ;;  %v1710_v17 = vmul.f32 %v1708_v14, %v1700_v10 }
0x1706   :  { %v1713_v18 = vmul.f32 0.7978846, %v1711_v15  ;;  %v1712_v19 = vadd.f32 %v1710_v17, %v1700_v10 }
0x1708   :  { %2471 = vtanh.f32 %v1713_v18  ;;  %v1714_v20 = vmul.f32 0.7978846, %v1712_v19 }
0x170a   :  { %2473 = vtanh.f32 %v1714_v20 }
0x1712   :  { %v2472_v21 = vpop.eup %2471 }
0x1713   :  { %v1717_v22 = vadd.f32 1.0, %v2472_v21 }
0x1714   :  { %v2474_v23 = vpop.eup %2473 }
0x1715   :  { %v1718_v29 = vadd.f32 1.0, %v2474_v23  ;;  %v1719_v30 = vmul.f32 %v1717_v22, %v1703_v24 }
0x1717   :  { %v1720_v31 = vmul.f32 %v1718_v29, %v1704_v28 }
0x1719   :  { %v1721_v34 = vpack.c.bf16 %v1720_v31, %v1719_v30 }
0x171b   :  { %2366 = vmatmul.mubr.msk.bf16.vlgmr.msra.gmra.mrb[48].mxu0 %vm894_vm5, %v1721_v34 }
0x17ee   :  { %v1800_v40 = vpop.f32.mrb[48].mxu0 }
0x17ef   :  { %v1801_v36 = vadd.f32 %v2117_v27, %v1800_v40  ;;  %v2367_v37 = vpop.f32.mrb[49].mxu0 }
0x17f0   :  { %v1803_v39 = vpop.f32.mrb[50].mxu0 }
0x17f1   :  { %v1804_v42 = vadd.f32 %v2117_v27, %v1803_v39  ;;  %v2368_v44 = vpop.f32.mrb[51].mxu0  ;;  %v1807_v46 = vadd.f32 %v1801_v36, %v1631_v0 }
0x17f3   :  { %v1813_v47 = vsel %vm67_vm0, %v1807_v46, 0.0  ;;  %v1808_v48 = vadd.f32 %v1804_v42, %v1632_v1 }
0x17f4   :  { %1814 = vadd.xlane.f32.xlu0 %v1813_v47 }
0x17f5   :  { %v1816_v49 = vsel %vm67_vm0, %v1808_v48, 0.0 }
0x17f6   :  { %1817 = vadd.xlane.f32.xlu1 %v1816_v49 }
0x1881   :  { %v1815_v50 = vpop.xlane.xlu0 %1814 }
0x1882   :  { %v1819_v51 = vmul.f32 0.03125, %v1815_v50 }
0x1883   :  { %v1818_v25 = vpop.xlane.xlu1 %1817 }
0x1884   :  { %v1821_v26 = vsub.f32 %v1807_v46, %v1819_v51  ;;  %v1820_v52 = vmul.f32 0.03125, %v1818_v25 }
0x1886   :  { %v1822_v45 = vsub.f32 %v1808_v48, %v1820_v52  ;;  %v1823_v41 = vmul.f32 %v1821_v26, %v1821_v26 }
0x1888   :  { %v1825_v53 = vsel %vm67_vm0, %v1823_v41, 0.0  ;;  %v1824_v54 = vmul.f32 %v1822_v45, %v1822_v45 }
0x1889   :  { %1826 = vadd.xlane.f32.xlu0 %v1825_v53 }
0x188a   :  { %v1828_v55 = vsel %vm67_vm0, %v1824_v54, 0.0 }
0x188b   :  { %1829 = vadd.xlane.f32.xlu1 %v1828_v55 }
0x188d   :  { %2003 = vadd.xlane.f32.xlu0 %v2002_v58 }
0x188f   :  { %2006 = vadd.xlane.f32.xlu1 %v2005_v59 }
0x1916   :  { %v1827_v61 = vpop.xlane.xlu0 %1826 }
0x1917   :  { %v1831_v60 = vmul.f32 0.03125, %v1827_v61 }
0x1918   :  { %v1830_v62 = vpop.xlane.xlu1 %1829 }
0x1919   :  { %v1833_v35 = vadd.f32 1e-12, %v1831_v60  ;;  %v1832_v63 = vmul.f32 0.03125, %v1830_v62 }
0x191a   :  { %v2004_v8 = vpop.xlane.xlu0 %2003 }
0x191b   :  { %2475 = vrsqrt.f32 %v1833_v35  ;;  %v1834_v0 = vadd.f32 1e-12, %v1832_v63  ;;  %v2008_v9 = vmax.f32 %v2004_v8, 1e-09 }
0x191c   :  { %v2007_v10 = vpop.xlane.xlu1 %2006 }
0x191d   :  { %2477 = vrsqrt.f32 %v1834_v0  ;;  %v2009_v11 = vmax.f32 %v2007_v10, 1e-09 }
0x191e   :  { %2479 = vrcp.f32 %v2008_v9 }
0x191f   :  { %2481 = vrcp.f32 %v2009_v11 }
0x1925   :  { %v2476_v1 = vpop.eup %2475 }
0x1926   :  { %v1837_v33 = vmul.f32 %v2476_v1, %v1821_v26 }
0x1927   :  { %v2478_v2 = vpop.eup %2477 }
0x1928   :  { %v1845_v4 = vmul.f32 %v2125_v32, %v1837_v33  ;;  %v1838_v5 = vmul.f32 %v2478_v2, %v1822_v45  ;;  %v2480_v12 = vpop.eup %2479 }
0x1929   :  { %v2482_v15 = vpop.eup %2481 }
0x192a   :  { %v1853_v38 = vadd.f32 %v2126_v3, %v1845_v4  ;;  %v1846_v6 = vmul.f32 %v2125_v32, %v1838_v5 }
0x192c   :  { %2370 = vmatpush3.msra.mxu1 %v1853_v38  ;;  %v1854_v7 = vadd.f32 %v2126_v3, %v1846_v6 }
0x192d   :  { %2374 = vmatprep.subr.mxu1 %v2509_v16  ;;  %2372 = vmatmul.mubr.msk.f32.vlgmr.msra.gmra.mrb[44].mxu1 %vm298_vm3, %v2483_v56 }
0x192e   :  { %2375 = vmatpush3.msra.mxu1 %v1854_v7  ;;  %2376 = vmatprep.mubr.msk.f32.mxu1 %vm2510_vm1, %v2509_v16 }
0x1931   :  { %2377 = vmatmul.mubr.msk.f32.vlgmr.msra.gmra.mrb[46].mxu1 %vm298_vm3, %v2484_v57 }
0x1a00   :  { %v1924_v43 = vpop.f32.mrb[44].mxu1 }
0x1a01   :  { %v2011_v13 = vmul.f32 %v2480_v12, %v1924_v43  ;;  %v2373_v14 = vpop.f32.mrb[45].mxu1 }
0x1a03   :  { %2015 = vst.msk [vmem:[#allocation2] sm:$0x1] %vm2014_vm7, %v2011_v13 }
0x1a04   :  { %v1997_v17 = vpop.f32.mrb[46].mxu1 }
0x1a05   :  { %v2013_v18 = vmul.f32 %v2482_v15, %v1997_v17  ;;  %v2378_v16 = vpop.f32.mrb[47].mxu1 }
0x1a07   :  { %2016 = vst.msk [vmem:[#allocation2 + $0x1] sm:$0x1] %vm2014_vm7, %v2013_v18 }
0x1a08   :  { %2496 = shalt.err (!%p2493_p4)
}
0x1a09   :  { %s2497_s0 = scalar_lea.hbm %s3029_s16, 32 }
0x1a0a   :  { %p2498_p5 = scmp.ne.s32.totalorder %s3029_s16, %s2497_s0  ;;  %p2501_p6 = scmp.lt.u32.totalorder %s2497_s0, %s3029_s16 }
0x1a0c   :  { %p2503_p7 = pnand %p2501_p6, %p2498_p5 }
0x1a0e   :  { %2506 = shalt.err (!%p2503_p7)
}
0x1a0f   :  { %s2518_s19 = smov 1  }
0x1a10   :  { %2028 = dma.vmem_to_hbm [thread:$0]  %s2023_s15, 32, %s3029_s16, [#allocation3], %s2516_s30, %s2516_s30, %s2518_s19  }
0x1a11   :  { %2507 = dma.done.wait [#allocation3], 32  }
0x1a12   :  { %2508 = vsyncadd [#allocation3], 4294967264 }
0x1a13   :  { %2032 = vsyncpa [#allocation3], 1 }

</bundles_post_ra>
